<compile_context>
chip_gen: v7x
topology: tpu7x:2x2x1
jax: 0.10.0
libtpu: 0.0.40
codegen_flags: <defaults>
</compile_context>

<pallas_src>
import functools

import jax
import jax.numpy as jnp
from jax import lax
from jax.experimental import pallas as pl
from jax.experimental.pallas import tpu as pltpu


def _round_up(x, m):
  return ((x + m - 1) // m) * m


# ----------------------------- Pallas kernel ------------------------------- #
def gru_fc_softmax_kernel(
    gx_ref,       # (Tc, Bblk, 3*Hp)  input-gate pre-activations for this block
                  #                   [x@W_ir + b_r | x@W_iz + b_z | x@W_in + b_in]
    w_h_ref,      # (Hp, 3*Hp)        fused hidden->gate weights [W_hr|W_hz|W_hn]
    b_hn_ref,     # (1, Hp) f32       hidden bias of the n gate (multiplied by r)
    len_ref,      # (Bblk, 1) int32   sequence lengths (0 for padded batch rows)
    mask_ref,     # (Bblk, 1) f32     1.0 iff len[b] == max(len) else 0.0
    fc_w_ref,     # (Hp, Op)
    fc_b_ref,     # (1, Op) f32
    out_ref,      # (Bblk, Op) f32    softmax probabilities (padded classes 0)
    h_ref,        # scratch (Bblk, Hp) f32  hidden state, carried across t blocks
    *, hidden_pad, num_classes, unroll,
):
  Tc, Bblk, _ = gx_ref.shape
  Hp = hidden_pad
  t_blk = pl.program_id(1)

  # New batch block -> reset the recurrent state (self.state = None).
  @pl.when(t_blk == 0)
  def _():
    h_ref[...] = jnp.zeros_like(h_ref)

  # Hoisted out of the recurrence (tiny, stay in registers).
  lens = len_ref[...]                                        # (Bblk, 1) int32
  b_hn = jnp.broadcast_to(b_hn_ref[...], (Bblk, Hp))         # (Bblk, Hp) f32
  t0 = t_blk * Tc                                            # global step offset

  def step(tl, h):
    gx = gx_ref[tl].astype(jnp.float32)                      # (Bblk, 3*Hp)
    # Single fused MXU matmul per step: (Bblk, Hp) @ (Hp, 3*Hp), f32 accum.
    hh = jnp.dot(h.astype(w_h_ref.dtype), w_h_ref[...],
                 preferred_element_type=jnp.float32)
    r = jax.nn.sigmoid(gx[:, :Hp] + hh[:, :Hp])
    z = jax.nn.sigmoid(gx[:, Hp:2 * Hp] + hh[:, Hp:2 * Hp])
    n = jnp.tanh(gx[:, 2 * Hp:] + r * (hh[:, 2 * Hp:] + b_hn))
    h_new = (1.0 - z) * n + z * h
    # Packed-sequence semantics: sequence b only advances while t < len[b].
    return jnp.where(t0 + tl < lens, h_new, h)

  h = lax.fori_loop(0, Tc, step, h_ref[...], unroll=unroll)
  h_ref[...] = h

  # Last time block: out[:, -1, :] after pad_packed_sequence is the final
  # hidden iff len == max(len) (else zeros), then fc1 + softmax.
  @pl.when(t_blk == pl.num_programs(1) - 1)
  def _():
    last = h * mask_ref[...]                                  # (Bblk, Hp)
    logits = (jnp.dot(last.astype(fc_w_ref.dtype), fc_w_ref[...],
                      preferred_element_type=jnp.float32)
              + fc_b_ref[...])                                # (Bblk, Op)
    # Softmax over the real classes only; padded lanes contribute exactly 0.
    lane = lax.broadcasted_iota(jnp.int32, logits.shape, 1)
    valid = lane < num_classes
    logits = jnp.where(valid, logits, jnp.float32(-1e30))
    m = jnp.max(logits, axis=-1, keepdims=True)
    e = jnp.where(valid, jnp.exp(logits - m), 0.0)
    out_ref[...] = e / jnp.sum(e, axis=-1, keepdims=True)


# ------------------------------- wrapper ------------------------------------ #
def text_rnn_forward(x_tokens, lengths, params, *,
                     compute_dtype=jnp.float32,   # bf16 => MXU operands only
                     time_chunk=16, batch_block=128):
  """x_tokens: (B, T) int32 token ids, lengths: (B,) int32 (descending)."""
  B, T = x_tokens.shape
  E = params["embedding"].shape[1]
  H = params["w_hr"].shape[0]
  O = params["fc_w"].shape[1]
  Hp = _round_up(H, 128)
  Op = _round_up(O, 128)

  # Batch padded to a sublane multiple so gx pages are sublane-dense.
  sub = 16 if compute_dtype == jnp.bfloat16 else 8
  Bblk = _round_up(min(batch_block, _round_up(B, sub)), sub)
  Bp = _round_up(B, Bblk)
  Tc = min(time_chunk, T)
  Tp = _round_up(T, Tc)

  f32 = jnp.float32
  pad_c = lambda w: jnp.pad(w, ((0, 0), (0, Hp - H)))          # pad columns
  pad_rc = lambda w: jnp.pad(w, ((0, Hp - H), (0, Hp - H)))    # pad rows+cols

  # Embedding lookup (gather) is glue; stays in plain JAX. Gather with the
  # transposed ids to produce (T, B, E) directly (no activation transpose).
  emb_tbe = jnp.take(params["embedding"], x_tokens.T, axis=0).astype(f32)

  # Hoisted input projection: one large matmul, input-side biases folded in.
  w_i_cat = jnp.concatenate(
      [pad_c(params["w_ir"]), pad_c(params["w_iz"]), pad_c(params["w_in"])],
      axis=1)                                                  # (E, 3*Hp)
  b_x_cat = jnp.concatenate(
      [pad_c(params["b_r"]), pad_c(params["b_z"]), pad_c(params["b_in"])],
      axis=1)                                                  # (1, 3*Hp)
  gx = (emb_tbe.reshape(T * B, E) @ w_i_cat + b_x_cat).reshape(T, B, 3 * Hp)
  # Pad time (frozen by t<len) and batch (len=0 rows, frozen at h=0).
  gx = jnp.pad(gx, ((0, Tp - T), (0, Bp - B), (0, 0))).astype(compute_dtype)

  # Fused + lane-padded hidden weights and fc weights (padding stays zero
  # through the recurrence: padded gate pre-activations are 0, so padded h
  # lanes remain exactly 0 given h0 = 0).
  w_h_cat = jnp.concatenate(
      [pad_rc(params["w_hr"]), pad_rc(params["w_hz"]), pad_rc(params["w_hn"])],
      axis=1).astype(compute_dtype)                            # (Hp, 3*Hp)
  b_hn_p = pad_c(params["b_hn"]).astype(f32)                   # (1, Hp)
  fc_w_p = jnp.pad(params["fc_w"],
                   ((0, Hp - H), (0, Op - O))).astype(compute_dtype)
  fc_b_p = jnp.pad(params["fc_b"], ((0, 0), (0, Op - O))).astype(f32)

  max_len = jnp.max(lengths)
  mask = jnp.pad((lengths == max_len).astype(f32), (0, Bp - B)).reshape(Bp, 1)
  len_col = jnp.pad(lengths.astype(jnp.int32), (0, Bp - B)).reshape(Bp, 1)

  num_b = Bp // Bblk
  num_t = Tp // Tc
  unroll = max(1, min(8, Tc))

  # VMEM budget: double-buffered gx block + weights + out + scratch, x2 margin.
  cb = jnp.dtype(compute_dtype).itemsize
  est = (2 * Tc * Bblk * 3 * Hp * cb          # gx (double-buffered)
         + 2 * Hp * 3 * Hp * cb               # w_h
         + 2 * Hp * Op * cb                   # fc_w
         + 2 * Bblk * Op * 4                  # out
         + Bblk * Hp * 4                      # hidden scratch
         + (1 << 20))                         # small operands + headroom
  vmem_limit = int(max(32 << 20, min(2 * est, 64 << 20)))

  kernel = functools.partial(gru_fc_softmax_kernel,
                             hidden_pad=Hp, num_classes=O, unroll=unroll)

  out_padded = pl.pallas_call(
      kernel,
      out_shape=jax.ShapeDtypeStruct((Bp, Op), f32),
      grid_spec=pltpu.PrefetchScalarGridSpec(
          num_scalar_prefetch=0,
          grid=(num_b, num_t),
          in_specs=[
              pl.BlockSpec((Tc, Bblk, 3 * Hp), lambda b, t: (t, b, 0)),  # gx
              pl.BlockSpec((Hp, 3 * Hp), lambda b, t: (0, 0)),           # w_h
              pl.BlockSpec((1, Hp), lambda b, t: (0, 0)),                # b_hn
              pl.BlockSpec((Bblk, 1), lambda b, t: (b, 0)),              # len
              pl.BlockSpec((Bblk, 1), lambda b, t: (b, 0)),              # mask
              pl.BlockSpec((Hp, Op), lambda b, t: (0, 0)),               # fc_w
              pl.BlockSpec((1, Op), lambda b, t: (0, 0)),                # fc_b
          ],
          out_specs=pl.BlockSpec((Bblk, Op), lambda b, t: (b, 0)),
          scratch_shapes=[pltpu.VMEM((Bblk, Hp), jnp.float32)],
      ),
      compiler_params=pltpu.CompilerParams(
          dimension_semantics=("parallel", "arbitrary"),
          vmem_limit_bytes=vmem_limit),
  )(gx, w_h_cat, b_hn_p, len_col, mask, fc_w_p, fc_b_p)
  return out_padded[:B, :O]


# ---------------------- pure-JAX reference (for checking) ------------------- #
def text_rnn_reference(x_tokens, lengths, params):
  B, T = x_tokens.shape
  H = params["w_hr"].shape[0]
  emb = jnp.take(params["embedding"], x_tokens, axis=0)        # (B, T, E)
  h = jnp.zeros((B, H), jnp.float32)
  for t in range(T):
    x_t = emb[:, t, :]
    r = jax.nn.sigmoid(x_t @ params["w_ir"] + h @ params["w_hr"] + params["b_r"])
    z = jax.nn.sigmoid(x_t @ params["w_iz"] + h @ params["w_hz"] + params["b_z"])
    n = jnp.tanh(x_t @ params["w_in"] + params["b_in"]
                 + r * (h @ params["w_hn"] + params["b_hn"]))
    h_new = (1.0 - z) * n + z * h
    h = jnp.where((t < lengths).reshape(B, 1), h_new, h)       # packed semantics
  last = h * (lengths == jnp.max(lengths)).astype(jnp.float32).reshape(B, 1)
  logits = last @ params["fc_w"] + params["fc_b"]
  return jax.nn.softmax(logits, axis=-1)


# ------------------------------ parameter init ------------------------------ #
def init_params(key, vocab, E, H, O, pad_idx=0):
  ks = jax.random.split(key, 12)
  scale = 0.1
  emb = scale * jax.random.normal(ks[0], (vocab, E), jnp.float32)
  emb = emb.at[pad_idx].set(0.0)  # padding_idx row is zero
  return {
      "embedding": emb,
      "w_ir": scale * jax.random.normal(ks[1], (E, H), jnp.float32),
      "w_iz": scale * jax.random.normal(ks[2], (E, H), jnp.float32),
      "w_in": scale * jax.random.normal(ks[3], (E, H), jnp.float32),
      "w_hr": scale * jax.random.normal(ks[4], (H, H), jnp.float32),
      "w_hz": scale * jax.random.normal(ks[5], (H, H), jnp.float32),
      "w_hn": scale * jax.random.normal(ks[6], (H, H), jnp.float32),
      # b_r = b_ir + b_hr, b_z = b_iz + b_hz; b_in / b_hn kept separate.
      "b_r": scale * jax.random.normal(ks[7], (1, H), jnp.float32),
      "b_z": scale * jax.random.normal(ks[8], (1, H), jnp.float32),
      "b_in": scale * jax.random.normal(ks[9], (1, H), jnp.float32),
      "b_hn": scale * jax.random.normal(ks[10], (1, H), jnp.float32),
      "fc_w": scale * jax.random.normal(ks[11], (H, O), jnp.float32),
      "fc_b": jnp.zeros((1, O), jnp.float32),
  }


if __name__ == "__main__":
  # Small shapes consistent with the module: embedding_size=256, hidden=100,
  # out_dim=2; small batch / sequence / vocab for the synthetic example.
  B, T, VOCAB, E, H, O = 2, 8, 50, 256, 100, 2

  key = jax.random.PRNGKey(0)
  k_tok, k_param = jax.random.split(key)
  params = init_params(k_param, VOCAB, E, H, O, pad_idx=0)

  x_full = jax.random.randint(k_tok, (B, T), 1, VOCAB, dtype=jnp.int32)

  # Case 1: longest sequence spans the full padded length T.
  lengths1 = jnp.array([T, T - 2], dtype=jnp.int32)
  x1 = jnp.where(jnp.arange(T)[None, :] < lengths1[:, None], x_full, 0)
  out1 = jax.block_until_ready(text_rnn_forward(x1, lengths1, params))
  ref1 = text_rnn_reference(x1, lengths1, params)
  assert out1.shape == (B, O)
  assert jnp.allclose(out1, ref1, atol=1e-4, rtol=1e-4), (out1, ref1)

  # Case 2: max(lengths) < T (pad_packed pads only to max(lengths)).
  lengths2 = jnp.array([T - 2, T - 3], dtype=jnp.int32)
  x2 = jnp.where(jnp.arange(T)[None, :] < lengths2[:, None], x_full, 0)
  out2 = jax.block_until_ready(text_rnn_forward(x2, lengths2, params))
  ref2 = text_rnn_reference(x2, lengths2, params)
  assert out2.shape == (B, O)
  assert jnp.allclose(out2, ref2, atol=1e-4, rtol=1e-4), (out2, ref2)

  # Case 3: bf16 MXU operands (gx / w_h / fc_w), f32 gate math + accumulation.
  out3 = jax.block_until_ready(
      text_rnn_forward(x1, lengths1, params, compute_dtype=jnp.bfloat16))
  assert out3.shape == (B, O)
  assert jnp.allclose(out3, ref1, atol=1e-2, rtol=1e-2), (out3, ref1)

  print("KERNEL_OK")
</pallas_src>

<mosaic_0001>
module attributes {stable_mosaic.version = 11 : i64} {
  func.func @gru_fc_softmax_kernel(%arg0: i32, %arg1: i32, %arg2: memref<8x8x384xf32, #tpu.memory_space<vmem>>, %arg3: memref<128x384xf32, #tpu.memory_space<vmem>>, %arg4: memref<1x128xf32, #tpu.memory_space<vmem>>, %arg5: memref<8x1xi32, #tpu.memory_space<vmem>>, %arg6: memref<8x1xf32, #tpu.memory_space<vmem>>, %arg7: memref<128x128xf32, #tpu.memory_space<vmem>>, %arg8: memref<1x128xf32, #tpu.memory_space<vmem>>, %arg9: memref<8x128xf32, #tpu.memory_space<vmem>>, %arg10: memref<8x128xf32, #tpu.memory_space<vmem>>) attributes {dimension_semantics = [#tpu.dimension_semantics<parallel>, #tpu.dimension_semantics<arbitrary>], iteration_bounds = array<i64: 1, 1>, scalar_prefetch = 0 : i64, scratch_operands = 1 : i64, tpu.core_type = #tpu.core_type<tc>, window_params = [{transform_indices = @transform_0, window_bounds = array<i64: 8, 8, 384>}, {pipeline_mode = #tpu.pipeline_mode<synchronous>, transform_indices = @transform_1, window_bounds = array<i64: 128, 384>}, {pipeline_mode = #tpu.pipeline_mode<synchronous>, transform_indices = @transform_2, window_bounds = array<i64: 1, 128>}, {transform_indices = @transform_3, window_bounds = array<i64: 8, 1>}, {transform_indices = @transform_4, window_bounds = array<i64: 8, 1>}, {pipeline_mode = #tpu.pipeline_mode<synchronous>, transform_indices = @transform_5, window_bounds = array<i64: 128, 128>}, {pipeline_mode = #tpu.pipeline_mode<synchronous>, transform_indices = @transform_6, window_bounds = array<i64: 1, 128>}, {transform_indices = @transform_7, window_bounds = array<i64: 8, 128>}]} {
    %c0_i32 = arith.constant 0 : i32
    %0 = arith.cmpi eq, %arg1, %c0_i32 : i32
    %1 = arith.extui %0 : i1 to i32
    %c0_i32_0 = arith.constant 0 : i32
    %2 = arith.cmpi ne, %1, %c0_i32_0 : i32
    scf.if %2 {
      %cst_75 = arith.constant 0.000000e+00 : f32
      %317 = vector.broadcast %cst_75 : f32 to vector<8x128xf32>
      %c0_76 = arith.constant 0 : index
      %c0_77 = arith.constant 0 : index
      %318 = vector.load %arg10[%c0_76, %c0_77] : memref<8x128xf32, #tpu.memory_space<vmem>>, vector<8x128xf32>
      tpu.vector_store %arg10[%c0_76, %c0_77], %317 {strides = array<i32>} : memref<8x128xf32, #tpu.memory_space<vmem>>, vector<8x128xf32>,
    } else {
    }
    %c0 = arith.constant 0 : index
    %c0_1 = arith.constant 0 : index
    %3 = vector.load %arg5[%c0, %c0_1] : memref<8x1xi32, #tpu.memory_space<vmem>>, vector<8x1xi32>
    %c0_2 = arith.constant 0 : index
    %c0_3 = arith.constant 0 : index
    %4 = vector.load %arg4[%c0_2, %c0_3] : memref<1x128xf32, #tpu.memory_space<vmem>>, vector<1x128xf32>
    %5 = vector.shape_cast %4 : vector<1x128xf32> to vector<1x128xf32>
    %6 = vector.broadcast %5 : vector<1x128xf32> to vector<8x128xf32>
    %c8_i32 = arith.constant 8 : i32
    %7 = arith.muli %arg1, %c8_i32 : i32
    %c0_4 = arith.constant 0 : index
    %c0_5 = arith.constant 0 : index
    %8 = vector.load %arg10[%c0_4, %c0_5] : memref<8x128xf32, #tpu.memory_space<vmem>>, vector<8x128xf32>
    %c0_i32_6 = arith.constant 0 : i32
    %9 = arith.index_cast %c0_i32_6 : i32 to index
    %c0_7 = arith.constant 0 : index
    %c0_8 = arith.constant 0 : index
    %10 = vector.load %arg2[%9, %c0_7, %c0_8] : memref<8x8x384xf32, #tpu.memory_space<vmem>>, vector<1x8x384xf32>
    %11 = vector.shape_cast %10 : vector<1x8x384xf32> to vector<8x384xf32>
    %c0_9 = arith.constant 0 : index
    %c0_10 = arith.constant 0 : index
    %12 = vector.load %arg3[%c0_9, %c0_10] : memref<128x384xf32, #tpu.memory_space<vmem>>, vector<128x384xf32>
    %cst = arith.constant dense<0.000000e+00> : vector<8x384xf32>
    %13 = tpu.matmul %8, %12, %cst {dimension_numbers = #tpu.dot_dimension_numbers<[1], [0], [0], [1], [0, 0, 1, 1], [], []>} : vector<8x128xf32>, vector<128x384xf32>, vector<8x384xf32> -> vector<8x384xf32>
    %14 = vector.extract_strided_slice %11 {offsets = [0, 0], sizes = [8, 128], strides = [1, 1]} : vector<8x384xf32> to vector<8x128xf32>
    %15 = vector.extract_strided_slice %13 {offsets = [0, 0], sizes = [8, 128], strides = [1, 1]} : vector<8x384xf32> to vector<8x128xf32>
    %16 = arith.addf %14, %15 : vector<8x128xf32>
    %17 = arith.negf %16 : vector<8x128xf32>
    %18 = math.exp %17 : vector<8x128xf32>
    %cst_11 = arith.constant 1.000000e+00 : f32
    %19 = vector.broadcast %cst_11 : f32 to vector<8x128xf32>
    %20 = arith.addf %19, %18 : vector<8x128xf32>
    %21 = arith.divf %19, %20 : vector<8x128xf32>
    %22 = vector.extract_strided_slice %11 {offsets = [0, 128], sizes = [8, 128], strides = [1, 1]} : vector<8x384xf32> to vector<8x128xf32>
    %23 = vector.extract_strided_slice %13 {offsets = [0, 128], sizes = [8, 128], strides = [1, 1]} : vector<8x384xf32> to vector<8x128xf32>
    %24 = arith.addf %22, %23 : vector<8x128xf32>
    %25 = arith.negf %24 : vector<8x128xf32>
    %26 = math.exp %25 : vector<8x128xf32>
    %cst_12 = arith.constant 1.000000e+00 : f32
    %27 = vector.broadcast %cst_12 : f32 to vector<8x128xf32>
    %28 = arith.addf %27, %26 : vector<8x128xf32>
    %29 = arith.divf %27, %28 : vector<8x128xf32>
    %30 = vector.extract_strided_slice %11 {offsets = [0, 256], sizes = [8, 128], strides = [1, 1]} : vector<8x384xf32> to vector<8x128xf32>
    %31 = vector.extract_strided_slice %13 {offsets = [0, 256], sizes = [8, 128], strides = [1, 1]} : vector<8x384xf32> to vector<8x128xf32>
    %32 = arith.addf %31, %6 : vector<8x128xf32>
    %33 = arith.mulf %21, %32 : vector<8x128xf32>
    %34 = arith.addf %30, %33 : vector<8x128xf32>
    %35 = math.tanh %34 : vector<8x128xf32>
    %cst_13 = arith.constant 1.000000e+00 : f32
    %36 = vector.broadcast %cst_13 : f32 to vector<8x128xf32>
    %37 = arith.subf %36, %29 : vector<8x128xf32>
    %38 = arith.mulf %37, %35 : vector<8x128xf32>
    %39 = arith.mulf %29, %8 : vector<8x128xf32>
    %40 = arith.addf %38, %39 : vector<8x128xf32>
    %41 = arith.addi %7, %c0_i32_6 : i32
    %42 = vector.broadcast %41 : i32 to vector<8x1xi32>
    %43 = arith.cmpi slt, %42, %3 : vector<8x1xi32>
    %44 = vector.shape_cast %43 : vector<8x1xi1> to vector<8x1xi1>
    %45 = vector.broadcast %44 : vector<8x1xi1> to vector<8x128xi1>
    %46 = arith.select %45, %40, %8 : vector<8x128xi1>, vector<8x128xf32>
    %c1_i32 = arith.constant 1 : i32
    %47 = arith.index_cast %c1_i32 : i32 to index
    %c0_14 = arith.constant 0 : index
    %c0_15 = arith.constant 0 : index
    %48 = vector.load %arg2[%47, %c0_14, %c0_15] : memref<8x8x384xf32, #tpu.memory_space<vmem>>, vector<1x8x384xf32>
    %49 = vector.shape_cast %48 : vector<1x8x384xf32> to vector<8x384xf32>
    %c0_16 = arith.constant 0 : index
    %c0_17 = arith.constant 0 : index
    %50 = vector.load %arg3[%c0_16, %c0_17] : memref<128x384xf32, #tpu.memory_space<vmem>>, vector<128x384xf32>
    %cst_18 = arith.constant dense<0.000000e+00> : vector<8x384xf32>
    %51 = tpu.matmul %46, %50, %cst_18 {dimension_numbers = #tpu.dot_dimension_numbers<[1], [0], [0], [1], [0, 0, 1, 1], [], []>} : vector<8x128xf32>, vector<128x384xf32>, vector<8x384xf32> -> vector<8x384xf32>
    %52 = vector.extract_strided_slice %49 {offsets = [0, 0], sizes = [8, 128], strides = [1, 1]} : vector<8x384xf32> to vector<8x128xf32>
    %53 = vector.extract_strided_slice %51 {offsets = [0, 0], sizes = [8, 128], strides = [1, 1]} : vector<8x384xf32> to vector<8x128xf32>
    %54 = arith.addf %52, %53 : vector<8x128xf32>
    %55 = arith.negf %54 : vector<8x128xf32>
    %56 = math.exp %55 : vector<8x128xf32>
    %cst_19 = arith.constant 1.000000e+00 : f32
    %57 = vector.broadcast %cst_19 : f32 to vector<8x128xf32>
    %58 = arith.addf %57, %56 : vector<8x128xf32>
    %59 = arith.divf %57, %58 : vector<8x128xf32>
    %60 = vector.extract_strided_slice %49 {offsets = [0, 128], sizes = [8, 128], strides = [1, 1]} : vector<8x384xf32> to vector<8x128xf32>
    %61 = vector.extract_strided_slice %51 {offsets = [0, 128], sizes = [8, 128], strides = [1, 1]} : vector<8x384xf32> to vector<8x128xf32>
    %62 = arith.addf %60, %61 : vector<8x128xf32>
    %63 = arith.negf %62 : vector<8x128xf32>
    %64 = math.exp %63 : vector<8x128xf32>
    %cst_20 = arith.constant 1.000000e+00 : f32
    %65 = vector.broadcast %cst_20 : f32 to vector<8x128xf32>
    %66 = arith.addf %65, %64 : vector<8x128xf32>
    %67 = arith.divf %65, %66 : vector<8x128xf32>
    %68 = vector.extract_strided_slice %49 {offsets = [0, 256], sizes = [8, 128], strides = [1, 1]} : vector<8x384xf32> to vector<8x128xf32>
    %69 = vector.extract_strided_slice %51 {offsets = [0, 256], sizes = [8, 128], strides = [1, 1]} : vector<8x384xf32> to vector<8x128xf32>
    %70 = arith.addf %69, %6 : vector<8x128xf32>
    %71 = arith.mulf %59, %70 : vector<8x128xf32>
    %72 = arith.addf %68, %71 : vector<8x128xf32>
    %73 = math.tanh %72 : vector<8x128xf32>
    %cst_21 = arith.constant 1.000000e+00 : f32
    %74 = vector.broadcast %cst_21 : f32 to vector<8x128xf32>
    %75 = arith.subf %74, %67 : vector<8x128xf32>
    %76 = arith.mulf %75, %73 : vector<8x128xf32>
    %77 = arith.mulf %67, %46 : vector<8x128xf32>
    %78 = arith.addf %76, %77 : vector<8x128xf32>
    %79 = arith.addi %7, %c1_i32 : i32
    %80 = vector.broadcast %79 : i32 to vector<8x1xi32>
    %81 = arith.cmpi slt, %80, %3 : vector<8x1xi32>
    %82 = vector.shape_cast %81 : vector<8x1xi1> to vector<8x1xi1>
    %83 = vector.broadcast %82 : vector<8x1xi1> to vector<8x128xi1>
    %84 = arith.select %83, %78, %46 : vector<8x128xi1>, vector<8x128xf32>
    %c2_i32 = arith.constant 2 : i32
    %85 = arith.index_cast %c2_i32 : i32 to index
    %c0_22 = arith.constant 0 : index
    %c0_23 = arith.constant 0 : index
    %86 = vector.load %arg2[%85, %c0_22, %c0_23] : memref<8x8x384xf32, #tpu.memory_space<vmem>>, vector<1x8x384xf32>
    %87 = vector.shape_cast %86 : vector<1x8x384xf32> to vector<8x384xf32>
    %c0_24 = arith.constant 0 : index
    %c0_25 = arith.constant 0 : index
    %88 = vector.load %arg3[%c0_24, %c0_25] : memref<128x384xf32, #tpu.memory_space<vmem>>, vector<128x384xf32>
    %cst_26 = arith.constant dense<0.000000e+00> : vector<8x384xf32>
    %89 = tpu.matmul %84, %88, %cst_26 {dimension_numbers = #tpu.dot_dimension_numbers<[1], [0], [0], [1], [0, 0, 1, 1], [], []>} : vector<8x128xf32>, vector<128x384xf32>, vector<8x384xf32> -> vector<8x384xf32>
    %90 = vector.extract_strided_slice %87 {offsets = [0, 0], sizes = [8, 128], strides = [1, 1]} : vector<8x384xf32> to vector<8x128xf32>
    %91 = vector.extract_strided_slice %89 {offsets = [0, 0], sizes = [8, 128], strides = [1, 1]} : vector<8x384xf32> to vector<8x128xf32>
    %92 = arith.addf %90, %91 : vector<8x128xf32>
    %93 = arith.negf %92 : vector<8x128xf32>
    %94 = math.exp %93 : vector<8x128xf32>
    %cst_27 = arith.constant 1.000000e+00 : f32
    %95 = vector.broadcast %cst_27 : f32 to vector<8x128xf32>
    %96 = arith.addf %95, %94 : vector<8x128xf32>
    %97 = arith.divf %95, %96 : vector<8x128xf32>
    %98 = vector.extract_strided_slice %87 {offsets = [0, 128], sizes = [8, 128], strides = [1, 1]} : vector<8x384xf32> to vector<8x128xf32>
    %99 = vector.extract_strided_slice %89 {offsets = [0, 128], sizes = [8, 128], strides = [1, 1]} : vector<8x384xf32> to vector<8x128xf32>
    %100 = arith.addf %98, %99 : vector<8x128xf32>
    %101 = arith.negf %100 : vector<8x128xf32>
    %102 = math.exp %101 : vector<8x128xf32>
    %cst_28 = arith.constant 1.000000e+00 : f32
    %103 = vector.broadcast %cst_28 : f32 to vector<8x128xf32>
    %104 = arith.addf %103, %102 : vector<8x128xf32>
    %105 = arith.divf %103, %104 : vector<8x128xf32>
    %106 = vector.extract_strided_slice %87 {offsets = [0, 256], sizes = [8, 128], strides = [1, 1]} : vector<8x384xf32> to vector<8x128xf32>
    %107 = vector.extract_strided_slice %89 {offsets = [0, 256], sizes = [8, 128], strides = [1, 1]} : vector<8x384xf32> to vector<8x128xf32>
    %108 = arith.addf %107, %6 : vector<8x128xf32>
    %109 = arith.mulf %97, %108 : vector<8x128xf32>
    %110 = arith.addf %106, %109 : vector<8x128xf32>
    %111 = math.tanh %110 : vector<8x128xf32>
    %cst_29 = arith.constant 1.000000e+00 : f32
    %112 = vector.broadcast %cst_29 : f32 to vector<8x128xf32>
    %113 = arith.subf %112, %105 : vector<8x128xf32>
    %114 = arith.mulf %113, %111 : vector<8x128xf32>
    %115 = arith.mulf %105, %84 : vector<8x128xf32>
    %116 = arith.addf %114, %115 : vector<8x128xf32>
    %117 = arith.addi %7, %c2_i32 : i32
    %118 = vector.broadcast %117 : i32 to vector<8x1xi32>
    %119 = arith.cmpi slt, %118, %3 : vector<8x1xi32>
    %120 = vector.shape_cast %119 : vector<8x1xi1> to vector<8x1xi1>
    %121 = vector.broadcast %120 : vector<8x1xi1> to vector<8x128xi1>
    %122 = arith.select %121, %116, %84 : vector<8x128xi1>, vector<8x128xf32>
    %c3_i32 = arith.constant 3 : i32
    %123 = arith.index_cast %c3_i32 : i32 to index
    %c0_30 = arith.constant 0 : index
    %c0_31 = arith.constant 0 : index
    %124 = vector.load %arg2[%123, %c0_30, %c0_31] : memref<8x8x384xf32, #tpu.memory_space<vmem>>, vector<1x8x384xf32>
    %125 = vector.shape_cast %124 : vector<1x8x384xf32> to vector<8x384xf32>
    %c0_32 = arith.constant 0 : index
    %c0_33 = arith.constant 0 : index
    %126 = vector.load %arg3[%c0_32, %c0_33] : memref<128x384xf32, #tpu.memory_space<vmem>>, vector<128x384xf32>
    %cst_34 = arith.constant dense<0.000000e+00> : vector<8x384xf32>
    %127 = tpu.matmul %122, %126, %cst_34 {dimension_numbers = #tpu.dot_dimension_numbers<[1], [0], [0], [1], [0, 0, 1, 1], [], []>} : vector<8x128xf32>, vector<128x384xf32>, vector<8x384xf32> -> vector<8x384xf32>
    %128 = vector.extract_strided_slice %125 {offsets = [0, 0], sizes = [8, 128], strides = [1, 1]} : vector<8x384xf32> to vector<8x128xf32>
    %129 = vector.extract_strided_slice %127 {offsets = [0, 0], sizes = [8, 128], strides = [1, 1]} : vector<8x384xf32> to vector<8x128xf32>
    %130 = arith.addf %128, %129 : vector<8x128xf32>
    %131 = arith.negf %130 : vector<8x128xf32>
    %132 = math.exp %131 : vector<8x128xf32>
    %cst_35 = arith.constant 1.000000e+00 : f32
    %133 = vector.broadcast %cst_35 : f32 to vector<8x128xf32>
    %134 = arith.addf %133, %132 : vector<8x128xf32>
    %135 = arith.divf %133, %134 : vector<8x128xf32>
    %136 = vector.extract_strided_slice %125 {offsets = [0, 128], sizes = [8, 128], strides = [1, 1]} : vector<8x384xf32> to vector<8x128xf32>
    %137 = vector.extract_strided_slice %127 {offsets = [0, 128], sizes = [8, 128], strides = [1, 1]} : vector<8x384xf32> to vector<8x128xf32>
    %138 = arith.addf %136, %137 : vector<8x128xf32>
    %139 = arith.negf %138 : vector<8x128xf32>
    %140 = math.exp %139 : vector<8x128xf32>
    %cst_36 = arith.constant 1.000000e+00 : f32
    %141 = vector.broadcast %cst_36 : f32 to vector<8x128xf32>
    %142 = arith.addf %141, %140 : vector<8x128xf32>
    %143 = arith.divf %141, %142 : vector<8x128xf32>
    %144 = vector.extract_strided_slice %125 {offsets = [0, 256], sizes = [8, 128], strides = [1, 1]} : vector<8x384xf32> to vector<8x128xf32>
    %145 = vector.extract_strided_slice %127 {offsets = [0, 256], sizes = [8, 128], strides = [1, 1]} : vector<8x384xf32> to vector<8x128xf32>
    %146 = arith.addf %145, %6 : vector<8x128xf32>
    %147 = arith.mulf %135, %146 : vector<8x128xf32>
    %148 = arith.addf %144, %147 : vector<8x128xf32>
    %149 = math.tanh %148 : vector<8x128xf32>
    %cst_37 = arith.constant 1.000000e+00 : f32
    %150 = vector.broadcast %cst_37 : f32 to vector<8x128xf32>
    %151 = arith.subf %150, %143 : vector<8x128xf32>
    %152 = arith.mulf %151, %149 : vector<8x128xf32>
    %153 = arith.mulf %143, %122 : vector<8x128xf32>
    %154 = arith.addf %152, %153 : vector<8x128xf32>
    %155 = arith.addi %7, %c3_i32 : i32
    %156 = vector.broadcast %155 : i32 to vector<8x1xi32>
    %157 = arith.cmpi slt, %156, %3 : vector<8x1xi32>
    %158 = vector.shape_cast %157 : vector<8x1xi1> to vector<8x1xi1>
    %159 = vector.broadcast %158 : vector<8x1xi1> to vector<8x128xi1>
    %160 = arith.select %159, %154, %122 : vector<8x128xi1>, vector<8x128xf32>
    %c4_i32 = arith.constant 4 : i32
    %161 = arith.index_cast %c4_i32 : i32 to index
    %c0_38 = arith.constant 0 : index
    %c0_39 = arith.constant 0 : index
    %162 = vector.load %arg2[%161, %c0_38, %c0_39] : memref<8x8x384xf32, #tpu.memory_space<vmem>>, vector<1x8x384xf32>
    %163 = vector.shape_cast %162 : vector<1x8x384xf32> to vector<8x384xf32>
    %c0_40 = arith.constant 0 : index
    %c0_41 = arith.constant 0 : index
    %164 = vector.load %arg3[%c0_40, %c0_41] : memref<128x384xf32, #tpu.memory_space<vmem>>, vector<128x384xf32>
    %cst_42 = arith.constant dense<0.000000e+00> : vector<8x384xf32>
    %165 = tpu.matmul %160, %164, %cst_42 {dimension_numbers = #tpu.dot_dimension_numbers<[1], [0], [0], [1], [0, 0, 1, 1], [], []>} : vector<8x128xf32>, vector<128x384xf32>, vector<8x384xf32> -> vector<8x384xf32>
    %166 = vector.extract_strided_slice %163 {offsets = [0, 0], sizes = [8, 128], strides = [1, 1]} : vector<8x384xf32> to vector<8x128xf32>
    %167 = vector.extract_strided_slice %165 {offsets = [0, 0], sizes = [8, 128], strides = [1, 1]} : vector<8x384xf32> to vector<8x128xf32>
    %168 = arith.addf %166, %167 : vector<8x128xf32>
    %169 = arith.negf %168 : vector<8x128xf32>
    %170 = math.exp %169 : vector<8x128xf32>
    %cst_43 = arith.constant 1.000000e+00 : f32
    %171 = vector.broadcast %cst_43 : f32 to vector<8x128xf32>
    %172 = arith.addf %171, %170 : vector<8x128xf32>
    %173 = arith.divf %171, %172 : vector<8x128xf32>
    %174 = vector.extract_strided_slice %163 {offsets = [0, 128], sizes = [8, 128], strides = [1, 1]} : vector<8x384xf32> to vector<8x128xf32>
    %175 = vector.extract_strided_slice %165 {offsets = [0, 128], sizes = [8, 128], strides = [1, 1]} : vector<8x384xf32> to vector<8x128xf32>
    %176 = arith.addf %174, %175 : vector<8x128xf32>
    %177 = arith.negf %176 : vector<8x128xf32>
    %178 = math.exp %177 : vector<8x128xf32>
    %cst_44 = arith.constant 1.000000e+00 : f32
    %179 = vector.broadcast %cst_44 : f32 to vector<8x128xf32>
    %180 = arith.addf %179, %178 : vector<8x128xf32>
    %181 = arith.divf %179, %180 : vector<8x128xf32>
    %182 = vector.extract_strided_slice %163 {offsets = [0, 256], sizes = [8, 128], strides = [1, 1]} : vector<8x384xf32> to vector<8x128xf32>
    %183 = vector.extract_strided_slice %165 {offsets = [0, 256], sizes = [8, 128], strides = [1, 1]} : vector<8x384xf32> to vector<8x128xf32>
    %184 = arith.addf %183, %6 : vector<8x128xf32>
    %185 = arith.mulf %173, %184 : vector<8x128xf32>
    %186 = arith.addf %182, %185 : vector<8x128xf32>
    %187 = math.tanh %186 : vector<8x128xf32>
    %cst_45 = arith.constant 1.000000e+00 : f32
    %188 = vector.broadcast %cst_45 : f32 to vector<8x128xf32>
    %189 = arith.subf %188, %181 : vector<8x128xf32>
    %190 = arith.mulf %189, %187 : vector<8x128xf32>
    %191 = arith.mulf %181, %160 : vector<8x128xf32>
    %192 = arith.addf %190, %191 : vector<8x128xf32>
    %193 = arith.addi %7, %c4_i32 : i32
    %194 = vector.broadcast %193 : i32 to vector<8x1xi32>
    %195 = arith.cmpi slt, %194, %3 : vector<8x1xi32>
    %196 = vector.shape_cast %195 : vector<8x1xi1> to vector<8x1xi1>
    %197 = vector.broadcast %196 : vector<8x1xi1> to vector<8x128xi1>
    %198 = arith.select %197, %192, %160 : vector<8x128xi1>, vector<8x128xf32>
    %c5_i32 = arith.constant 5 : i32
    %199 = arith.index_cast %c5_i32 : i32 to index
    %c0_46 = arith.constant 0 : index
    %c0_47 = arith.constant 0 : index
    %200 = vector.load %arg2[%199, %c0_46, %c0_47] : memref<8x8x384xf32, #tpu.memory_space<vmem>>, vector<1x8x384xf32>
    %201 = vector.shape_cast %200 : vector<1x8x384xf32> to vector<8x384xf32>
    %c0_48 = arith.constant 0 : index
    %c0_49 = arith.constant 0 : index
    %202 = vector.load %arg3[%c0_48, %c0_49] : memref<128x384xf32, #tpu.memory_space<vmem>>, vector<128x384xf32>
    %cst_50 = arith.constant dense<0.000000e+00> : vector<8x384xf32>
    %203 = tpu.matmul %198, %202, %cst_50 {dimension_numbers = #tpu.dot_dimension_numbers<[1], [0], [0], [1], [0, 0, 1, 1], [], []>} : vector<8x128xf32>, vector<128x384xf32>, vector<8x384xf32> -> vector<8x384xf32>
    %204 = vector.extract_strided_slice %201 {offsets = [0, 0], sizes = [8, 128], strides = [1, 1]} : vector<8x384xf32> to vector<8x128xf32>
    %205 = vector.extract_strided_slice %203 {offsets = [0, 0], sizes = [8, 128], strides = [1, 1]} : vector<8x384xf32> to vector<8x128xf32>
    %206 = arith.addf %204, %205 : vector<8x128xf32>
    %207 = arith.negf %206 : vector<8x128xf32>
    %208 = math.exp %207 : vector<8x128xf32>
    %cst_51 = arith.constant 1.000000e+00 : f32
    %209 = vector.broadcast %cst_51 : f32 to vector<8x128xf32>
    %210 = arith.addf %209, %208 : vector<8x128xf32>
    %211 = arith.divf %209, %210 : vector<8x128xf32>
    %212 = vector.extract_strided_slice %201 {offsets = [0, 128], sizes = [8, 128], strides = [1, 1]} : vector<8x384xf32> to vector<8x128xf32>
    %213 = vector.extract_strided_slice %203 {offsets = [0, 128], sizes = [8, 128], strides = [1, 1]} : vector<8x384xf32> to vector<8x128xf32>
    %214 = arith.addf %212, %213 : vector<8x128xf32>
    %215 = arith.negf %214 : vector<8x128xf32>
    %216 = math.exp %215 : vector<8x128xf32>
    %cst_52 = arith.constant 1.000000e+00 : f32
    %217 = vector.broadcast %cst_52 : f32 to vector<8x128xf32>
    %218 = arith.addf %217, %216 : vector<8x128xf32>
    %219 = arith.divf %217, %218 : vector<8x128xf32>
    %220 = vector.extract_strided_slice %201 {offsets = [0, 256], sizes = [8, 128], strides = [1, 1]} : vector<8x384xf32> to vector<8x128xf32>
    %221 = vector.extract_strided_slice %203 {offsets = [0, 256], sizes = [8, 128], strides = [1, 1]} : vector<8x384xf32> to vector<8x128xf32>
    %222 = arith.addf %221, %6 : vector<8x128xf32>
    %223 = arith.mulf %211, %222 : vector<8x128xf32>
    %224 = arith.addf %220, %223 : vector<8x128xf32>
    %225 = math.tanh %224 : vector<8x128xf32>
    %cst_53 = arith.constant 1.000000e+00 : f32
    %226 = vector.broadcast %cst_53 : f32 to vector<8x128xf32>
    %227 = arith.subf %226, %219 : vector<8x128xf32>
    %228 = arith.mulf %227, %225 : vector<8x128xf32>
    %229 = arith.mulf %219, %198 : vector<8x128xf32>
    %230 = arith.addf %228, %229 : vector<8x128xf32>
    %231 = arith.addi %7, %c5_i32 : i32
    %232 = vector.broadcast %231 : i32 to vector<8x1xi32>
    %233 = arith.cmpi slt, %232, %3 : vector<8x1xi32>
    %234 = vector.shape_cast %233 : vector<8x1xi1> to vector<8x1xi1>
    %235 = vector.broadcast %234 : vector<8x1xi1> to vector<8x128xi1>
    %236 = arith.select %235, %230, %198 : vector<8x128xi1>, vector<8x128xf32>
    %c6_i32 = arith.constant 6 : i32
    %237 = arith.index_cast %c6_i32 : i32 to index
    %c0_54 = arith.constant 0 : index
    %c0_55 = arith.constant 0 : index
    %238 = vector.load %arg2[%237, %c0_54, %c0_55] : memref<8x8x384xf32, #tpu.memory_space<vmem>>, vector<1x8x384xf32>
    %239 = vector.shape_cast %238 : vector<1x8x384xf32> to vector<8x384xf32>
    %c0_56 = arith.constant 0 : index
    %c0_57 = arith.constant 0 : index
    %240 = vector.load %arg3[%c0_56, %c0_57] : memref<128x384xf32, #tpu.memory_space<vmem>>, vector<128x384xf32>
    %cst_58 = arith.constant dense<0.000000e+00> : vector<8x384xf32>
    %241 = tpu.matmul %236, %240, %cst_58 {dimension_numbers = #tpu.dot_dimension_numbers<[1], [0], [0], [1], [0, 0, 1, 1], [], []>} : vector<8x128xf32>, vector<128x384xf32>, vector<8x384xf32> -> vector<8x384xf32>
    %242 = vector.extract_strided_slice %239 {offsets = [0, 0], sizes = [8, 128], strides = [1, 1]} : vector<8x384xf32> to vector<8x128xf32>
    %243 = vector.extract_strided_slice %241 {offsets = [0, 0], sizes = [8, 128], strides = [1, 1]} : vector<8x384xf32> to vector<8x128xf32>
    %244 = arith.addf %242, %243 : vector<8x128xf32>
    %245 = arith.negf %244 : vector<8x128xf32>
    %246 = math.exp %245 : vector<8x128xf32>
    %cst_59 = arith.constant 1.000000e+00 : f32
    %247 = vector.broadcast %cst_59 : f32 to vector<8x128xf32>
    %248 = arith.addf %247, %246 : vector<8x128xf32>
    %249 = arith.divf %247, %248 : vector<8x128xf32>
    %250 = vector.extract_strided_slice %239 {offsets = [0, 128], sizes = [8, 128], strides = [1, 1]} : vector<8x384xf32> to vector<8x128xf32>
    %251 = vector.extract_strided_slice %241 {offsets = [0, 128], sizes = [8, 128], strides = [1, 1]} : vector<8x384xf32> to vector<8x128xf32>
    %252 = arith.addf %250, %251 : vector<8x128xf32>
    %253 = arith.negf %252 : vector<8x128xf32>
    %254 = math.exp %253 : vector<8x128xf32>
    %cst_60 = arith.constant 1.000000e+00 : f32
    %255 = vector.broadcast %cst_60 : f32 to vector<8x128xf32>
    %256 = arith.addf %255, %254 : vector<8x128xf32>
    %257 = arith.divf %255, %256 : vector<8x128xf32>
    %258 = vector.extract_strided_slice %239 {offsets = [0, 256], sizes = [8, 128], strides = [1, 1]} : vector<8x384xf32> to vector<8x128xf32>
    %259 = vector.extract_strided_slice %241 {offsets = [0, 256], sizes = [8, 128], strides = [1, 1]} : vector<8x384xf32> to vector<8x128xf32>
    %260 = arith.addf %259, %6 : vector<8x128xf32>
    %261 = arith.mulf %249, %260 : vector<8x128xf32>
    %262 = arith.addf %258, %261 : vector<8x128xf32>
    %263 = math.tanh %262 : vector<8x128xf32>
    %cst_61 = arith.constant 1.000000e+00 : f32
    %264 = vector.broadcast %cst_61 : f32 to vector<8x128xf32>
    %265 = arith.subf %264, %257 : vector<8x128xf32>
    %266 = arith.mulf %265, %263 : vector<8x128xf32>
    %267 = arith.mulf %257, %236 : vector<8x128xf32>
    %268 = arith.addf %266, %267 : vector<8x128xf32>
    %269 = arith.addi %7, %c6_i32 : i32
    %270 = vector.broadcast %269 : i32 to vector<8x1xi32>
    %271 = arith.cmpi slt, %270, %3 : vector<8x1xi32>
    %272 = vector.shape_cast %271 : vector<8x1xi1> to vector<8x1xi1>
    %273 = vector.broadcast %272 : vector<8x1xi1> to vector<8x128xi1>
    %274 = arith.select %273, %268, %236 : vector<8x128xi1>, vector<8x128xf32>
    %c7_i32 = arith.constant 7 : i32
    %275 = arith.index_cast %c7_i32 : i32 to index
    %c0_62 = arith.constant 0 : index
    %c0_63 = arith.constant 0 : index
    %276 = vector.load %arg2[%275, %c0_62, %c0_63] : memref<8x8x384xf32, #tpu.memory_space<vmem>>, vector<1x8x384xf32>
    %277 = vector.shape_cast %276 : vector<1x8x384xf32> to vector<8x384xf32>
    %c0_64 = arith.constant 0 : index
    %c0_65 = arith.constant 0 : index
    %278 = vector.load %arg3[%c0_64, %c0_65] : memref<128x384xf32, #tpu.memory_space<vmem>>, vector<128x384xf32>
    %cst_66 = arith.constant dense<0.000000e+00> : vector<8x384xf32>
    %279 = tpu.matmul %274, %278, %cst_66 {dimension_numbers = #tpu.dot_dimension_numbers<[1], [0], [0], [1], [0, 0, 1, 1], [], []>} : vector<8x128xf32>, vector<128x384xf32>, vector<8x384xf32> -> vector<8x384xf32>
    %280 = vector.extract_strided_slice %277 {offsets = [0, 0], sizes = [8, 128], strides = [1, 1]} : vector<8x384xf32> to vector<8x128xf32>
    %281 = vector.extract_strided_slice %279 {offsets = [0, 0], sizes = [8, 128], strides = [1, 1]} : vector<8x384xf32> to vector<8x128xf32>
    %282 = arith.addf %280, %281 : vector<8x128xf32>
    %283 = arith.negf %282 : vector<8x128xf32>
    %284 = math.exp %283 : vector<8x128xf32>
    %cst_67 = arith.constant 1.000000e+00 : f32
    %285 = vector.broadcast %cst_67 : f32 to vector<8x128xf32>
    %286 = arith.addf %285, %284 : vector<8x128xf32>
    %287 = arith.divf %285, %286 : vector<8x128xf32>
    %288 = vector.extract_strided_slice %277 {offsets = [0, 128], sizes = [8, 128], strides = [1, 1]} : vector<8x384xf32> to vector<8x128xf32>
    %289 = vector.extract_strided_slice %279 {offsets = [0, 128], sizes = [8, 128], strides = [1, 1]} : vector<8x384xf32> to vector<8x128xf32>
    %290 = arith.addf %288, %289 : vector<8x128xf32>
    %291 = arith.negf %290 : vector<8x128xf32>
    %292 = math.exp %291 : vector<8x128xf32>
    %cst_68 = arith.constant 1.000000e+00 : f32
    %293 = vector.broadcast %cst_68 : f32 to vector<8x128xf32>
    %294 = arith.addf %293, %292 : vector<8x128xf32>
    %295 = arith.divf %293, %294 : vector<8x128xf32>
    %296 = vector.extract_strided_slice %277 {offsets = [0, 256], sizes = [8, 128], strides = [1, 1]} : vector<8x384xf32> to vector<8x128xf32>
    %297 = vector.extract_strided_slice %279 {offsets = [0, 256], sizes = [8, 128], strides = [1, 1]} : vector<8x384xf32> to vector<8x128xf32>
    %298 = arith.addf %297, %6 : vector<8x128xf32>
    %299 = arith.mulf %287, %298 : vector<8x128xf32>
    %300 = arith.addf %296, %299 : vector<8x128xf32>
    %301 = math.tanh %300 : vector<8x128xf32>
    %cst_69 = arith.constant 1.000000e+00 : f32
    %302 = vector.broadcast %cst_69 : f32 to vector<8x128xf32>
    %303 = arith.subf %302, %295 : vector<8x128xf32>
    %304 = arith.mulf %303, %301 : vector<8x128xf32>
    %305 = arith.mulf %295, %274 : vector<8x128xf32>
    %306 = arith.addf %304, %305 : vector<8x128xf32>
    %307 = arith.addi %7, %c7_i32 : i32
    %308 = vector.broadcast %307 : i32 to vector<8x1xi32>
    %309 = arith.cmpi slt, %308, %3 : vector<8x1xi32>
    %310 = vector.shape_cast %309 : vector<8x1xi1> to vector<8x1xi1>
    %311 = vector.broadcast %310 : vector<8x1xi1> to vector<8x128xi1>
    %312 = arith.select %311, %306, %274 : vector<8x128xi1>, vector<8x128xf32>
    %c8_i32_70 = arith.constant 8 : i32
    %c0_71 = arith.constant 0 : index
    %c0_72 = arith.constant 0 : index
    %313 = vector.load %arg10[%c0_71, %c0_72] : memref<8x128xf32, #tpu.memory_space<vmem>>, vector<8x128xf32>
    tpu.vector_store %arg10[%c0_71, %c0_72], %312 {strides = array<i32>} : memref<8x128xf32, #tpu.memory_space<vmem>>, vector<8x128xf32>,
    %c0_i32_73 = arith.constant 0 : i32
    %314 = arith.cmpi eq, %arg1, %c0_i32_73 : i32
    %315 = arith.extui %314 : i1 to i32
    %c0_i32_74 = arith.constant 0 : i32
    %316 = arith.cmpi ne, %315, %c0_i32_74 : i32
    scf.if %316 {
      %c0_75 = arith.constant 0 : index
      %c0_76 = arith.constant 0 : index
      %317 = vector.load %arg6[%c0_75, %c0_76] : memref<8x1xf32, #tpu.memory_space<vmem>>, vector<8x1xf32>
      %318 = vector.broadcast %317 : vector<8x1xf32> to vector<8x128xf32>
      %319 = arith.mulf %312, %318 : vector<8x128xf32>
      %c0_77 = arith.constant 0 : index
      %c0_78 = arith.constant 0 : index
      %320 = vector.load %arg7[%c0_77, %c0_78] : memref<128x128xf32, #tpu.memory_space<vmem>>, vector<128x128xf32>
      %cst_79 = arith.constant dense<0.000000e+00> : vector<8x128xf32>
      %321 = tpu.matmul %319, %320, %cst_79 {dimension_numbers = #tpu.dot_dimension_numbers<[1], [0], [0], [1], [0, 0, 1, 1], [], []>} : vector<8x128xf32>, vector<128x128xf32>, vector<8x128xf32> -> vector<8x128xf32>
      %c0_80 = arith.constant 0 : index
      %c0_81 = arith.constant 0 : index
      %322 = vector.load %arg8[%c0_80, %c0_81] : memref<1x128xf32, #tpu.memory_space<vmem>>, vector<1x128xf32>
      %323 = vector.broadcast %322 : vector<1x128xf32> to vector<8x128xf32>
      %324 = arith.addf %321, %323 : vector<8x128xf32>
      %325 = tpu.iota {dimensions = array<i32: 1>} : vector<8x128xi32>
      %c2_i32_82 = arith.constant 2 : i32
      %326 = vector.broadcast %c2_i32_82 : i32 to vector<8x128xi32>
      %327 = arith.cmpi slt, %325, %326 : vector<8x128xi32>
      %cst_83 = arith.constant -1.000000e+30 : f32
      %328 = vector.broadcast %cst_83 : f32 to vector<8x128xf32>
      %329 = arith.select %327, %324, %328 : vector<8x128xi1>, vector<8x128xf32>
      %cst_84 = arith.constant dense<0xFF800000> : vector<8xf32>
      %330 = vector.multi_reduction <maximumf>, %329, %cst_84 [1] : vector<8x128xf32> to vector<8xf32>
      %331 = vector.shape_cast %330 : vector<8xf32> to vector<8x1xf32>
      %332 = vector.broadcast %331 : vector<8x1xf32> to vector<8x128xf32>
      %333 = arith.subf %329, %332 : vector<8x128xf32>
      %334 = math.exp %333 : vector<8x128xf32>
      %cst_85 = arith.constant 0.000000e+00 : f32
      %335 = vector.broadcast %cst_85 : f32 to vector<8x128xf32>
      %336 = arith.select %327, %334, %335 : vector<8x128xi1>, vector<8x128xf32>
      %cst_86 = arith.constant dense<0.000000e+00> : vector<8xf32>
      %337 = vector.multi_reduction <add>, %336, %cst_86 [1] : vector<8x128xf32> to vector<8xf32>
      %338 = vector.shape_cast %337 : vector<8xf32> to vector<8x1xf32>
      %339 = vector.broadcast %338 : vector<8x1xf32> to vector<8x128xf32>
      %340 = arith.divf %336, %339 : vector<8x128xf32>
      %c0_87 = arith.constant 0 : index
      %c0_88 = arith.constant 0 : index
      %341 = vector.load %arg9[%c0_87, %c0_88] : memref<8x128xf32, #tpu.memory_space<vmem>>, vector<8x128xf32>
      tpu.vector_store %arg9[%c0_87, %c0_88], %340 {strides = array<i32>} : memref<8x128xf32, #tpu.memory_space<vmem>>, vector<8x128xf32>,
    } else {
    }
    return
  }
  func.func @transform_0(%arg0: i32, %arg1: i32) -> (i32, i32, i32) {
    %c0_i32 = arith.constant 0 : i32
    %c0_i32_0 = arith.constant 0 : i32
    return %arg1, %arg0, %c0_i32 : i32, i32, i32
  }
  func.func @transform_1(%arg0: i32, %arg1: i32) -> (i32, i32) {
    %c0_i32 = arith.constant 0 : i32
    %c0_i32_0 = arith.constant 0 : i32
    %c0_i32_1 = arith.constant 0 : i32
    return %c0_i32, %c0_i32_0 : i32, i32
  }
  func.func @transform_2(%arg0: i32, %arg1: i32) -> (i32, i32) {
    %c0_i32 = arith.constant 0 : i32
    %c0_i32_0 = arith.constant 0 : i32
    %c0_i32_1 = arith.constant 0 : i32
    return %c0_i32, %c0_i32_0 : i32, i32
  }
  func.func @transform_3(%arg0: i32, %arg1: i32) -> (i32, i32) {
    %c0_i32 = arith.constant 0 : i32
    %c0_i32_0 = arith.constant 0 : i32
    return %arg0, %c0_i32 : i32, i32
  }
  func.func @transform_4(%arg0: i32, %arg1: i32) -> (i32, i32) {
    %c0_i32 = arith.constant 0 : i32
    %c0_i32_0 = arith.constant 0 : i32
    return %arg0, %c0_i32 : i32, i32
  }
  func.func @transform_5(%arg0: i32, %arg1: i32) -> (i32, i32) {
    %c0_i32 = arith.constant 0 : i32
    %c0_i32_0 = arith.constant 0 : i32
    %c0_i32_1 = arith.constant 0 : i32
    return %c0_i32, %c0_i32_0 : i32, i32
  }
  func.func @transform_6(%arg0: i32, %arg1: i32) -> (i32, i32) {
    %c0_i32 = arith.constant 0 : i32
    %c0_i32_0 = arith.constant 0 : i32
    %c0_i32_1 = arith.constant 0 : i32
    return %c0_i32, %c0_i32_0 : i32, i32
  }
  func.func @transform_7(%arg0: i32, %arg1: i32) -> (i32, i32) {
    %c0_i32 = arith.constant 0 : i32
    %c0_i32_0 = arith.constant 0 : i32
    return %arg0, %c0_i32 : i32, i32
  }
}

</mosaic_0001>

<bundles_post_ra>
// kernel: tpu_custom_call.1
= control target key start
LH: loop header
LB: loop body
LE: loop exit
PB: predicated region body
PF: predicated region fallthrough
CT: control target
= control target key end

     0   :  { %12 = vsyncpa [#allocation4], 0  ;;  %s3361_s0 = inlined_call_operand.hbm [shape: f32[8,8,384], index: 0, kind: input, shape index: {}]   ;;  %s3362_s1 = inlined_call_operand.hbm [shape: f32[128,384], index: 1, kind: input, shape index: {}]   ;;  %s3363_s2 = inlined_call_operand.vmem [shape: f32[1,128], index: 2, kind: input, shape index: {}]   ;;  %s3364_s3 = inlined_call_operand.vmem [shape: s32[8,1], index: 3, kind: input, shape index: {}]   ;;  %s3365_s4 = inlined_call_operand.vmem [shape: f32[8,1], index: 4, kind: input, shape index: {}]   ;;  %s3366_s5 = inlined_call_operand.hbm [shape: f32[128,128], index: 5, kind: input, shape index: {}]   ;;  %s3367_s6 = inlined_call_operand.vmem [shape: f32[1,128], index: 6, kind: input, shape index: {}]   ;;  %s3368_s7 = inlined_call_operand.hbm [shape: f32[8,128], index: 7, kind: output, shape index: {}]  }
   0x1   :  { %13 = vsyncpa [#allocation7], 0 }
   0x2   :  { %14 = vsyncpa [#allocation5], 0  ;;  %s2832_s24 = smov [#allocation6]   ;;  %s2833_s26 = smov [#allocation3]  }
   0x3   :  { %s32_s25 = sshll.u32 %s2832_s24, 4  ;;  %s20_s27 = sshll.u32 %s2833_s26, 4  ;;  %s33_s25 = int_to_ptr.vmem [resolvable:$true] %s32_s25  ;;  %s2884_s27 = int_to_ptr.vmem [resolvable:$true] %s20_s27 }
   0x4   :  { %s2738_s30 = scalar_lea.hbm %s3362_s1, 6144 }
   0x5   :  { %p2739_p0 = scmp.ne.s32.totalorder %s3362_s1, %s2738_s30  ;;  %p2742_p1 = scmp.lt.u32.totalorder %s2738_s30, %s3362_s1 }
   0x7   :  { %p2744_p2 = pnand %p2742_p1, %p2739_p0 }
   0x9   :  { %2747 = shalt.err (!%p2744_p2)
}
   0xa   :  { %s2748_s12 = scalar_lea.vmem %s33_s25, 6144  ;;  %p2753_p4 = scmp.lt.s32.totalorder %s33_s25, %s33_s25 }
   0xb   :  { %p2749_p3 = scmp.ne.s32.totalorder %s33_s25, %s2748_s12  ;;  %p2754_p5 = scmp.lt.s32.totalorder %s2748_s12, %s2748_s12 }
   0xd   :  { %p2755_p6 = por %p2754_p5, %p2753_p4 }
   0xf   :  { %p2756_p7 = pnand %p2755_p6, %p2749_p3 }
  0x11   :  { %2759 = shalt.err (!%p2756_p7)
}
  0x12   :  { %s2834_s13 = smov 384   ;;  %s2835_s14 = smov 24  }
  0x13   :  { %38 = dma.hbm_to_vmem [thread:$0]  %s3362_s1, 6144, %s33_s25, [#allocation7], %s2834_s13, %s2834_s13, %s2835_s14  }
  0x14   :  { %s2760_s19 = scalar_lea.hbm %s3361_s0, 3072 }
  0x15   :  { %p2761_p8 = scmp.ne.s32.totalorder %s3361_s0, %s2760_s19  ;;  %p2764_p9 = scmp.lt.u32.totalorder %s2760_s19, %s3361_s0 }
  0x17   :  { %p2766_p10 = pnand %p2764_p9, %p2761_p8 }
  0x19   :  { %2769 = shalt.err (!%p2766_p10)
}
  0x1a   :  { %s2770_s24 = scalar_lea.vmem %s2884_s27, 3072  ;;  %p2775_p12 = scmp.lt.s32.totalorder %s2884_s27, %s2884_s27 }
  0x1b   :  { %p2771_p11 = scmp.ne.s32.totalorder %s2884_s27, %s2770_s24  ;;  %p2776_p13 = scmp.lt.s32.totalorder %s2770_s24, %s2770_s24 }
  0x1d   :  { %p2777_p0 = por %p2776_p13, %p2775_p12 }
  0x1f   :  { %p2778_p1 = pnand %p2777_p0, %p2771_p11 }
  0x21   :  { %2781 = shalt.err (!%p2778_p1)
}
  0x22   :  { %26 = dma.hbm_to_vmem [thread:$0]  %s3361_s0, 3072, %s2884_s27, [#allocation4], %s2834_s13, %s2834_s13, %s2835_s14  }
  0x23   :  { %s2836_s26 = smov [#allocation8]   ;;  %s2782_s8 = scalar_lea.hbm %s3366_s5, 2048 }
  0x24   :  { %s50_s28 = sshll.u32 %s2836_s26, 4  ;;  %p2783_p2 = scmp.ne.s32.totalorder %s3366_s5, %s2782_s8  ;;  %s51_s28 = int_to_ptr.vmem [resolvable:$true] %s50_s28 }
  0x25   :  { %p2786_p3 = scmp.lt.u32.totalorder %s2782_s8, %s3366_s5 }
  0x27   :  { %p2788_p4 = pnand %p2786_p3, %p2783_p2 }
  0x29   :  { %2791 = shalt.err (!%p2788_p4)
}
  0x2a   :  { %s2792_s15 = scalar_lea.vmem %s51_s28, 2048  ;;  %p2797_p6 = scmp.lt.s32.totalorder %s51_s28, %s51_s28 }
  0x2b   :  { %p2793_p5 = scmp.ne.s32.totalorder %s51_s28, %s2792_s15  ;;  %p2798_p7 = scmp.lt.s32.totalorder %s2792_s15, %s2792_s15 }
  0x2d   :  { %p2799_p8 = por %p2798_p7, %p2797_p6 }
  0x2f   :  { %p2800_p9 = pnand %p2799_p8, %p2793_p5 }
  0x31   :  { %2803 = shalt.err (!%p2800_p9)
}
  0x32   :  { %s2837_s0 = smov 128   ;;  %s2838_s27 = smov 8  }
  0x33   :  { %56 = dma.hbm_to_vmem [thread:$0]  %s3366_s5, 2048, %s51_s28, [#allocation7], %s2837_s0, %s2837_s0, %s2838_s27  }
  0x34   :  { %2826 = dma.done.wait [#allocation4], 3072  }
  0x35   :  { %2827 = vsyncadd [#allocation4], 4294964224 }
  0x36   :  { %2828 = dma.done.wait [#allocation7], 8192  }
  0x37   :  { %2829 = vsyncadd [#allocation7], 4294959104  ;;  %v2839_v0 = vmov 0.0|0.0   ;;  %v2840_v1 = vmov 0.0   ;;  %vm2841_vm0 = vmmov 0   ;;  %v2842_v2 = vmov 0  }
  0x38   :  { %2200 = vmatprep.subr.bf16.mxu1 %v2839_v0  ;;  %198 = vmatprep.mubr.f32.mxu0 %v2840_v1  ;;  %v87_v3 = vld [vmem:[#allocation6 + $0x8] sm:$0xff]  ;;  %v90_v4 = vld [vmem:[#allocation6 + $0x20] sm:$0xff]  ;;  %v89_v7 = vld [vmem:[#allocation6 + $0x18] sm:$0xff]  ;;  %s2843_s20 = smov [#allocation9]  }
  0x39   :  { %1885 = vmatprep.mubr.msk.f32.mxu1 %vm2841_vm0, %v2840_v1  ;;  %2652 = vset.pattern.permute.xlu0 %v2842_v2  ;;  %v86_v5 = vld [vmem:[#allocation6] sm:$0xff]  ;;  %v2933_v6 = vpack.c.bf16 %v90_v4, %v87_v3  ;;  %v93_v8 = vld [vmem:[#allocation6 + $0x38] sm:$0xff]  ;;  %v96_v9 = vld [vmem:[#allocation6 + $0x50] sm:$0xff]  ;;  %s1662_s21 = sshll.u32 %s2843_s20, 4  ;;  %s1663_s21 = int_to_ptr.vmem [resolvable:$true] %s1662_s21 }
  0x3a   :  { %2653 = vset.pattern.permute.xlu1 %v2842_v2  ;;  %v2935_v10 = vpack.c.bf16 %v89_v7, %v86_v5  ;;  %v2937_v11 = vpack.c.bf16 %v96_v9, %v93_v8  ;;  %v92_v12 = vld [vmem:[#allocation6 + $0x30] sm:$0xff]  ;;  %v95_v13 = vld [vmem:[#allocation6 + $0x48] sm:$0xff]  ;;  %v102_v15 = vld [vmem:[#allocation6 + $0x80] sm:$0xff]  ;;  %p2809_p11 = scmp.lt.s32.totalorder %s1663_s21, %s1663_s21 }
  0x3b   :  { %v99_v14 = vld [vmem:[#allocation6 + $0x68] sm:$0xff]  ;;  %2169 = vmatprep.subr.bf16.mxu0 %v2933_v6  ;;  %v2941_v16 = vpack.c.bf16 %v95_v13, %v92_v12  ;;  %v98_v18 = vld [vmem:[#allocation6 + $0x60] sm:$0xff]  ;;  %v101_v19 = vld [vmem:[#allocation6 + $0x78] sm:$0xff] }
  0x3c   :  { %2171 = vmatpush1.bf16.msra.mxu0 %v2935_v10  ;;  %v2944_v17 = vpack.c.bf16 %v102_v15, %v99_v14  ;;  %v105_v20 = vld [vmem:[#allocation6 + $0x98] sm:$0xff]  ;;  %v108_v21 = vld [vmem:[#allocation6 + $0xb0] sm:$0xff]  ;;  %v2947_v22 = vpack.c.bf16 %v101_v19, %v98_v18  ;;  %v107_v25 = vld [vmem:[#allocation6 + $0xa8] sm:$0xff] }
  0x3d   :  { %2173 = vmatprep.subr.bf16.mxu0 %v2937_v11  ;;  %v104_v23 = vld [vmem:[#allocation6 + $0x90] sm:$0xff]  ;;  %v2950_v24 = vpack.c.bf16 %v108_v21, %v105_v20  ;;  %v91_v27 = vld [vmem:[#allocation6 + $0x28] sm:$0xff]  ;;  %v114_v29 = vld [vmem:[#allocation6 + $0xe0] sm:$0xff] }
  0x3e   :  { %v88_v26 = vld [vmem:[#allocation6 + $0x10] sm:$0xff]  ;;  %v111_v28 = vld [vmem:[#allocation6 + $0xc8] sm:$0xff]  ;;  %v94_v31 = vld [vmem:[#allocation6 + $0x40] sm:$0xff]  ;;  %v2955_v33 = vpack.c.bf16 %v107_v25, %v104_v23 }
  0x3f   :  { %v2952_v30 = vpack.c.bf16 %v91_v27, %v88_v26  ;;  %v97_v32 = vld [vmem:[#allocation6 + $0x58] sm:$0xff]  ;;  %v110_v34 = vld [vmem:[#allocation6 + $0xc0] sm:$0xff]  ;;  %v2961_v36 = vpack.c.bf16 %v114_v29, %v111_v28  ;;  %v100_v38 = vld [vmem:[#allocation6 + $0x70] sm:$0xff] }
  0x40   :  { %2175 = vmatpush1.bf16.msra.mxu0 %v2941_v16  ;;  %v2958_v35 = vpack.c.bf16 %v97_v32, %v94_v31  ;;  %v113_v37 = vld [vmem:[#allocation6 + $0xd8] sm:$0xff]  ;;  %v103_v39 = vld [vmem:[#allocation6 + $0x88] sm:$0xff]  ;;  %v120_v41 = vld [vmem:[#allocation6 + $0x110] sm:$0xff] }
  0x41   :  { %2177 = vmatprep.subr.bf16.mxu0 %v2944_v17  ;;  %2202 = vmatpush3.bf16.msra.mxu1 %v2952_v30  ;;  %v117_v40 = vld [vmem:[#allocation6 + $0xf8] sm:$0xff]  ;;  %v2965_v42 = vpack.c.bf16 %v113_v37, %v110_v34  ;;  %v116_v43 = vld [vmem:[#allocation6 + $0xf0] sm:$0xff]  ;;  %v2968_v44 = vpack.c.bf16 %v103_v39, %v100_v38  ;;  %v2973_v45 = vld [vmem:[%s3364_s3] sm:$0xff] }
  0x42   :  { %2203 = vmatprep.subr.bf16.mxu1 %v2839_v0  ;;  %v2976_v46 = vpack.c.bf16 %v120_v41, %v117_v40  ;;  %v119_v47 = vld [vmem:[#allocation6 + $0x108] sm:$0xff]  ;;  %v106_v48 = vld [vmem:[#allocation6 + $0xa0] sm:$0xff]  ;;  %v109_v49 = vld [vmem:[#allocation6 + $0xb8] sm:$0xff]  ;;  %vm1675_vm1 = vcmp.gt.s32.totalorder %v2973_v45, 0  ;;  %vm1678_vm2 = vcmp.gt.s32.totalorder %v2973_v45, 1  ;;  %vm1687_vm3 = vcmp.gt.s32.totalorder %v2973_v45, 4 }
  0x43   :  { %v123_v50 = vld [vmem:[#allocation6 + $0x128] sm:$0xff]  ;;  %v126_v51 = vld [vmem:[#allocation6 + $0x140] sm:$0xff]  ;;  %v299_v52 = vsel %vm1675_vm1, 1, %v2842_v2  ;;  %v2983_v53 = vpack.c.bf16 %v119_v47, %v116_v43  ;;  %v2986_v55 = vpack.c.bf16 %v109_v49, %v106_v48  ;;  %v475_v56 = vsel %vm1678_vm2, 1, %v2842_v2  ;;  %v125_v58 = vld [vmem:[#allocation6 + $0x138] sm:$0xff] }
  0x44   :  { %2179 = vmatpush1.bf16.msra.mxu0 %v2947_v22  ;;  %301 = vperm.xlu0 %2652, %v299_v52   ;;  %v122_v54 = vld [vmem:[#allocation6 + $0x120] sm:$0xff]  ;;  %v2990_v57 = vpack.c.bf16 %v126_v51, %v123_v50  ;;  %v112_v59 = vld [vmem:[#allocation6 + $0xd0] sm:$0xff]  ;;  %v115_v60 = vld [vmem:[#allocation6 + $0xe8] sm:$0xff]  ;;  %v1003_v5 = vsel %vm1687_vm3, 1, %v2842_v2  ;;  %vm1693_vm4 = vcmp.gt.s32.totalorder %v2973_v45, 6  ;;  %vm1681_vm6 = vcmp.gt.s32.totalorder %v2973_v45, 2 }
  0x45   :  { %2181 = vmatprep.subr.bf16.mxu0 %v2950_v24  ;;  %2205 = vmatpush3.bf16.msra.mxu1 %v2958_v35  ;;  %v129_v61 = vld [vmem:[#allocation6 + $0x158] sm:$0xff]  ;;  %v132_v62 = vld [vmem:[#allocation6 + $0x170] sm:$0xff]  ;;  %v2995_v63 = vpack.c.bf16 %v125_v58, %v122_v54  ;;  %v2998_v4 = vpack.c.bf16 %v115_v60, %v112_v59  ;;  %v131_v8 = vld [vmem:[#allocation6 + $0x168] sm:$0xff]  ;;  %v1355_v15 = vsel %vm1693_vm4, 1, %v2842_v2  ;;  %vm1684_vm7 = vcmp.gt.s32.totalorder %v2973_v45, 3 }
  0x46   :  { %2206 = vmatprep.subr.bf16.mxu1 %v2839_v0  ;;  %v128_v3 = vld [vmem:[#allocation6 + $0x150] sm:$0xff]  ;;  %v3002_v7 = vpack.c.bf16 %v132_v62, %v129_v61  ;;  %v118_v9 = vld [vmem:[#allocation6 + $0x100] sm:$0xff]  ;;  %v121_v12 = vld [vmem:[#allocation6 + $0x118] sm:$0xff]  ;;  %vm1690_vm8 = vcmp.gt.s32.totalorder %v2973_v45, 5  ;;  %vm1696_vm9 = vcmp.gt.s32.totalorder %v2973_v45, 7 }
  0x47   :  { %v3007_v13 = vpack.c.bf16 %v131_v8, %v128_v3  ;;  %v3010_v14 = vpack.c.bf16 %v121_v12, %v118_v9  ;;  %v124_v18 = vld [vmem:[#allocation6 + $0x130] sm:$0xff]  ;;  %v127_v19 = vld [vmem:[#allocation6 + $0x148] sm:$0xff]  ;;  %v1541_v21 = vld [vmem:[%s3365_s4] sm:$0xff]  ;;  %v651_v9 = vsel %vm1681_vm6, 1, %v2842_v2  ;;  %v827_v12 = vsel %vm1684_vm7, 1, %v2842_v2 }
  0x48   :  { %2183 = vmatpush1.bf16.msra.mxu0 %v2955_v33  ;;  %477 = vperm.xlu0 %2652, %v475_v56   ;;  %v3017_v20 = vpack.c.bf16 %v127_v19, %v124_v18  ;;  %v130_v23 = vld [vmem:[#allocation6 + $0x160] sm:$0xff]  ;;  %v133_v25 = vld [vmem:[#allocation6 + $0x178] sm:$0xff]  ;;  %v84_v31 = vld [vmem:[#allocation3 + $0x8] sm:$0xff]  ;;  %v1531_v18 = vsel %vm1696_vm9, 1, %v2842_v2 }
  0x49   :  { %2185 = vmatprep.subr.bf16.mxu0 %v2961_v36  ;;  %2208 = vmatpush3.bf16.msra.mxu1 %v2968_v44  ;;  %v3026_v26 = vpack.c.bf16 %v133_v25, %v130_v23  ;;  %v83_v27 = vld [vmem:[#allocation3] sm:$0xff]  ;;  %v85_v52 = vld [vmem:[#allocation3 + $0x10] sm:$0xff]  ;;  %v306_v19 = vld [vmem:[#allocation3 + $0x18] sm:$0xff] }
  0x4a   :  { %2209 = vmatprep.subr.bf16.mxu1 %v2839_v0  ;;  %v3070_v48 = vld [vmem:[%s3363_s2] ss:$0 sm:$0xff]  ;;  %653 = vperm.xlu1 %2653, %v651_v9  }
  0x4c   :  { %2187 = vmatpush1.bf16.msra.mxu0 %v2965_v42  ;;  %1005 = vperm.xlu0 %2652, %v1003_v5  }
  0x4d   :  { %2189 = vmatprep.subr.bf16.mxu0 %v2976_v46  ;;  %2211 = vmatpush3.bf16.msra.mxu1 %v2986_v55 }
  0x4e   :  { %2212 = vmatprep.subr.bf16.mxu1 %v2839_v0  ;;  %829 = vperm.xlu1 %2653, %v827_v12  }
  0x50   :  { %2191 = vmatpush1.bf16.msra.mxu0 %v2983_v53  ;;  %1357 = vperm.xlu0 %2652, %v1355_v15   ;;  %v1179_v15 = vsel %vm1690_vm8, 1, %v2842_v2 }
  0x51   :  { %2193 = vmatprep.subr.bf16.mxu0 %v2990_v57  ;;  %2214 = vmatpush3.bf16.msra.mxu1 %v2998_v4 }
  0x52   :  { %2215 = vmatprep.subr.bf16.mxu1 %v2839_v0  ;;  %1181 = vperm.xlu1 %2653, %v1179_v15  }
  0x54   :  { %2195 = vmatpush1.bf16.msra.mxu0 %v2995_v63  ;;  %1544 = vperm.xlu0 %2652, %v1541_v21   ;;  %v307_v21 = vld [vmem:[#allocation3 + $0x20] sm:$0xff] }
  0x55   :  { %2197 = vmatprep.subr.bf16.mxu0 %v3002_v7  ;;  %2217 = vmatpush3.bf16.msra.mxu1 %v3010_v14 }
  0x56   :  { %2218 = vmatprep.subr.bf16.mxu1 %v2839_v0  ;;  %1533 = vperm.xlu1 %2653, %v1531_v18  }
  0x58   :  { %2199 = vmatpush1.bf16.msra.mxu0 %v3007_v13 }
  0x59   :  { %2225 = vmatprep.subr.bf16.mxu0 %v2933_v6  ;;  %2220 = vmatpush3.bf16.msra.mxu1 %v3017_v20 }
  0x5a   :  { %2221 = vmatprep.subr.bf16.mxu1 %v2839_v0 }
  0x5b   :  { %199 = vmatmul.mubr.f32.vlgmr.msra.gmra.mrb[0].mxu0 %v2840_v1 }
  0x5c   :  { %2227 = vmatpush1.bf16.msra.mxu0 %v2935_v10  ;;  %373 = vmatprep.mubr.f32.mxu0 %v2840_v1 }
  0x5d   :  { %2229 = vmatprep.subr.bf16.mxu0 %v2937_v11  ;;  %2223 = vmatpush3.bf16.msra.mxu1 %v3026_v26 }
  0x5e   :  { %2256 = vmatprep.subr.bf16.mxu1 %v2839_v0 }
  0x60   :  { %2231 = vmatpush1.bf16.msra.mxu0 %v2941_v16  ;;  %1886 = vmatmul.mubr.f32.vlgmr.msra.gmra.mrb[0].mxu1 %v2840_v1 }
  0x61   :  { %2233 = vmatprep.subr.bf16.mxu0 %v2944_v17  ;;  %2258 = vmatpush3.bf16.msra.mxu1 %v2952_v30 }
  0x62   :  { %2259 = vmatprep.subr.bf16.mxu1 %v2839_v0  ;;  %1920 = vmatprep.mubr.msk.f32.mxu1 %vm2841_vm0, %v2840_v1 }
  0x64   :  { %2235 = vmatpush1.bf16.msra.mxu0 %v2947_v22 }
  0x65   :  { %2237 = vmatprep.subr.bf16.mxu0 %v2950_v24  ;;  %2261 = vmatpush3.bf16.msra.mxu1 %v2958_v35 }
  0x66   :  { %2262 = vmatprep.subr.bf16.mxu1 %v2839_v0 }
  0x68   :  { %2239 = vmatpush1.bf16.msra.mxu0 %v2955_v33 }
  0x69   :  { %2241 = vmatprep.subr.bf16.mxu0 %v2961_v36  ;;  %2264 = vmatpush3.bf16.msra.mxu1 %v2968_v44 }
  0x6a   :  { %2265 = vmatprep.subr.bf16.mxu1 %v2839_v0 }
  0x6c   :  { %2243 = vmatpush1.bf16.msra.mxu0 %v2965_v42 }
  0x6d   :  { %2245 = vmatprep.subr.bf16.mxu0 %v2976_v46  ;;  %2267 = vmatpush3.bf16.msra.mxu1 %v2986_v55 }
  0x6e   :  { %2268 = vmatprep.subr.bf16.mxu1 %v2839_v0 }
  0x70   :  { %2247 = vmatpush1.bf16.msra.mxu0 %v2983_v53 }
  0x71   :  { %2249 = vmatprep.subr.bf16.mxu0 %v2990_v57  ;;  %2270 = vmatpush3.bf16.msra.mxu1 %v2998_v4 }
  0x72   :  { %2271 = vmatprep.subr.bf16.mxu1 %v2839_v0 }
  0x74   :  { %2251 = vmatpush1.bf16.msra.mxu0 %v2995_v63 }
  0x75   :  { %2253 = vmatprep.subr.bf16.mxu0 %v3002_v7  ;;  %2273 = vmatpush3.bf16.msra.mxu1 %v3010_v14 }
  0x76   :  { %2274 = vmatprep.subr.bf16.mxu1 %v2839_v0 }
  0x78   :  { %2255 = vmatpush1.bf16.msra.mxu0 %v3007_v13 }
  0x79   :  { %2281 = vmatprep.subr.bf16.mxu0 %v2933_v6  ;;  %2276 = vmatpush3.bf16.msra.mxu1 %v3017_v20 }
  0x7a   :  { %2277 = vmatprep.subr.bf16.mxu1 %v2839_v0 }
  0x7d   :  { %2279 = vmatpush3.bf16.msra.mxu1 %v3026_v26 }
  0x7e   :  { %2312 = vmatprep.subr.bf16.mxu1 %v2839_v0 }
  0xc3   :  { %v302_v3 = vpop.permute.xlu0 %301 }
  0xc4   :  { %vm303_vm5 = vcmp.eq.s32.totalorder %v302_v3, 1 }
 0x12e   :  { %v200_v28 = vpop.f32.mrb[0].mxu0 }
 0x12f   :  { %v275_v29 = vadd.f32 %v200_v28, %v83_v27  ;;  %v202_v32 = vpop.f32.mrb[1].mxu0 }
 0x130   :  { %v282_v37 = vadd.f32 %v202_v32, %v84_v31 }
 0x131   :  { %v1673_v34 = vmul.f32 -1.442695, %v275_v29 }
 0x132   :  { %v1674_v38 = vmul.f32 -1.442695, %v282_v37 }
 0x133   :  { %2654 = vpow2.f32 %v1673_v34  ;;  %v271_v39 = vpop.f32.mrb[0].mxu1 }
 0x134   :  { %v1887_v40 = vpop.f32.mrb[1].mxu1  ;;  %2656 = vpow2.f32 %v1674_v38  ;;  %v289_v50 = vadd.f32 %v3070_v48, %v271_v39 }
 0x13d   :  { %v2655_v41 = vpop.eup %2654 }
 0x13e   :  { %v279_v43 = vadd.f32 1.0, %v2655_v41  ;;  %v2657_v47 = vpop.eup %2656  ;;  %v308_v41 = vld [vmem:[#allocation3 + $0x28] sm:$0xff] }
 0x13f   :  { %v286_v49 = vadd.f32 1.0, %v2657_v47 }
 0x140   :  { %2658 = vrcp.f32 %v279_v43 }
 0x141   :  { %2660 = vrcp.f32 %v286_v49 }
 0x14a   :  { %v2659_v51 = vpop.eup %2658 }
 0x14b   :  { %v290_v54 = vmul.f32 %v2659_v51, %v289_v50  ;;  %v2661_v58 = vpop.eup %2660 }
 0x14c   :  { %v293_v59 = vsub.f32 1.0, %v2661_v58  ;;  %v295_v62 = vmul.f32 0.0, %v2661_v58 }
 0x14d   :  { %v291_v56 = vadd.f32 %v290_v54, %v85_v52 }
 0x14f   :  { %2662 = vtanh.f32 %v291_v56  ;;  %v478_v56 = vpop.permute.xlu0 %477 }
 0x150   :  { %vm479_vm10 = vcmp.eq.s32.totalorder %v478_v56, 1 }
 0x159   :  { %v2663_v60 = vpop.eup %2662 }
 0x15a   :  { %v294_v61 = vmul.f32 %v2663_v60, %v293_v59  ;;  %v482_v60 = vld [vmem:[#allocation3 + $0x30] sm:$0xff] }
 0x15c   :  { %v296_v5 = vadd.f32 %v295_v62, %v294_v61 }
 0x15e   :  { %v3073_v8 = vsel %vm303_vm5, %v296_v5, 0.0  ;;  %1698 = vmatmul.mubr.msk.f32.vlgmr.msra.gmra.mrb[2].mxu0 %vm303_vm5, %v296_v5  ;;  %1921 = vmatmul.mubr.msk.f32.vlgmr.msra.gmra.mrb[2].mxu1 %vm303_vm5, %v296_v5  ;;  %v483_v5 = vld [vmem:[#allocation3 + $0x38] sm:$0xff] }
 0x15f   :  { %2283 = vmatpush1.bf16.msra.mxu0 %v2935_v10  ;;  %2314 = vmatpush3.bf16.msra.mxu1 %v2952_v30 }
 0x160   :  { %2285 = vmatprep.subr.bf16.mxu0 %v2937_v11  ;;  %2315 = vmatprep.subr.bf16.mxu1 %v2839_v0 }
 0x161   :  { %549 = vmatprep.mubr.f32.mxu0 %v2840_v1  ;;  %1955 = vmatprep.mubr.msk.f32.mxu1 %vm2841_vm0, %v2840_v1 }
 0x163   :  { %2287 = vmatpush1.bf16.msra.mxu0 %v2941_v16  ;;  %2317 = vmatpush3.bf16.msra.mxu1 %v2958_v35 }
 0x164   :  { %2289 = vmatprep.subr.bf16.mxu0 %v2944_v17  ;;  %2318 = vmatprep.subr.bf16.mxu1 %v2839_v0 }
 0x167   :  { %2291 = vmatpush1.bf16.msra.mxu0 %v2947_v22  ;;  %2320 = vmatpush3.bf16.msra.mxu1 %v2968_v44 }
 0x168   :  { %2293 = vmatprep.subr.bf16.mxu0 %v2950_v24  ;;  %2321 = vmatprep.subr.bf16.mxu1 %v2839_v0 }
 0x16b   :  { %2295 = vmatpush1.bf16.msra.mxu0 %v2955_v33  ;;  %2323 = vmatpush3.bf16.msra.mxu1 %v2986_v55 }
 0x16c   :  { %2297 = vmatprep.subr.bf16.mxu0 %v2961_v36  ;;  %2324 = vmatprep.subr.bf16.mxu1 %v2839_v0 }
 0x16f   :  { %2299 = vmatpush1.bf16.msra.mxu0 %v2965_v42  ;;  %2326 = vmatpush3.bf16.msra.mxu1 %v2998_v4 }
 0x170   :  { %2301 = vmatprep.subr.bf16.mxu0 %v2976_v46  ;;  %2327 = vmatprep.subr.bf16.mxu1 %v2839_v0 }
 0x173   :  { %2303 = vmatpush1.bf16.msra.mxu0 %v2983_v53  ;;  %2329 = vmatpush3.bf16.msra.mxu1 %v3010_v14 }
 0x174   :  { %2305 = vmatprep.subr.bf16.mxu0 %v2990_v57  ;;  %2330 = vmatprep.subr.bf16.mxu1 %v2839_v0 }
 0x177   :  { %2307 = vmatpush1.bf16.msra.mxu0 %v2995_v63  ;;  %2332 = vmatpush3.bf16.msra.mxu1 %v3017_v20 }
 0x178   :  { %2309 = vmatprep.subr.bf16.mxu0 %v3002_v7  ;;  %2333 = vmatprep.subr.bf16.mxu1 %v2839_v0 }
 0x17b   :  { %2311 = vmatpush1.bf16.msra.mxu0 %v3007_v13  ;;  %2335 = vmatpush3.bf16.msra.mxu1 %v3026_v26 }
 0x17c   :  { %2337 = vmatprep.subr.bf16.mxu0 %v2933_v6  ;;  %2368 = vmatprep.subr.bf16.mxu1 %v2839_v0 }
 0x231   :  { %v375_v23 = vpop.f32.mrb[2].mxu0  ;;  %v446_v25 = vpop.f32.mrb[2].mxu1 }
 0x232   :  { %v450_v27 = vadd.f32 %v375_v23, %v306_v19  ;;  %v377_v28 = vpop.f32.mrb[3].mxu0  ;;  %v1922_v29 = vpop.f32.mrb[3].mxu1  ;;  %v464_v2 = vadd.f32 %v3070_v48, %v446_v25 }
 0x233   :  { %v457_v31 = vadd.f32 %v377_v28, %v307_v21  ;;  %v484_v29 = vld [vmem:[#allocation3 + $0x40] sm:$0xff] }
 0x234   :  { %v1676_v32 = vmul.f32 -1.442695, %v450_v27 }
 0x235   :  { %v1677_v34 = vmul.f32 -1.442695, %v457_v31 }
 0x236   :  { %2664 = vpow2.f32 %v1676_v32 }
 0x237   :  { %2666 = vpow2.f32 %v1677_v34 }
 0x240   :  { %v2665_v37 = vpop.eup %2664 }
 0x241   :  { %v2667_v38 = vpop.eup %2666  ;;  %v454_v39 = vadd.f32 1.0, %v2665_v37 }
 0x242   :  { %v461_v45 = vadd.f32 1.0, %v2667_v38 }
 0x243   :  { %2668 = vrcp.f32 %v454_v39  ;;  %v654_v39 = vpop.permute.xlu1 %653 }
 0x244   :  { %2670 = vrcp.f32 %v461_v45  ;;  %vm655_vm11 = vcmp.eq.s32.totalorder %v654_v39, 1 }
 0x24d   :  { %v2669_v40 = vpop.eup %2668 }
 0x24e   :  { %v2671_v43 = vpop.eup %2670  ;;  %v465_v47 = vmul.f32 %v2669_v40, %v464_v2 }
 0x24f   :  { %v470_v49 = vmul.f32 %v2671_v43, %v3073_v8  ;;  %v468_v51 = vsub.f32 1.0, %v2671_v43  ;;  %v658_v43 = vld [vmem:[#allocation3 + $0x48] sm:$0xff] }
 0x250   :  { %v466_v50 = vadd.f32 %v465_v47, %v308_v41 }
 0x252   :  { %2672 = vtanh.f32 %v466_v50 }
 0x25c   :  { %v2673_v52 = vpop.eup %2672 }
 0x25d   :  { %v469_v54 = vmul.f32 %v2673_v52, %v468_v51  ;;  %v659_v51 = vld [vmem:[#allocation3 + $0x50] sm:$0xff] }
 0x25f   :  { %v471_v58 = vadd.f32 %v470_v49, %v469_v54 }
 0x261   :  { %v3121_v59 = vsel %vm479_vm10, %v471_v58, %v3073_v8 }
 0x262   :  { %550 = vmatmul.mubr.f32.vlgmr.msra.gmra.mrb[4].mxu0 %v3121_v59  ;;  %1956 = vmatmul.mubr.f32.vlgmr.msra.gmra.mrb[4].mxu1 %v3121_v59 }
 0x263   :  { %2339 = vmatpush1.bf16.msra.mxu0 %v2935_v10  ;;  %2370 = vmatpush3.bf16.msra.mxu1 %v2952_v30 }
 0x264   :  { %2341 = vmatprep.subr.bf16.mxu0 %v2937_v11  ;;  %2371 = vmatprep.subr.bf16.mxu1 %v2839_v0 }
 0x265   :  { %725 = vmatprep.mubr.f32.mxu0 %v2840_v1  ;;  %1990 = vmatprep.mubr.msk.f32.mxu1 %vm2841_vm0, %v2840_v1 }
 0x267   :  { %2343 = vmatpush1.bf16.msra.mxu0 %v2941_v16  ;;  %2373 = vmatpush3.bf16.msra.mxu1 %v2958_v35 }
 0x268   :  { %2345 = vmatprep.subr.bf16.mxu0 %v2944_v17  ;;  %2374 = vmatprep.subr.bf16.mxu1 %v2839_v0 }
 0x26b   :  { %2347 = vmatpush1.bf16.msra.mxu0 %v2947_v22  ;;  %2376 = vmatpush3.bf16.msra.mxu1 %v2968_v44 }
 0x26c   :  { %2349 = vmatprep.subr.bf16.mxu0 %v2950_v24  ;;  %2377 = vmatprep.subr.bf16.mxu1 %v2839_v0 }
 0x26f   :  { %2351 = vmatpush1.bf16.msra.mxu0 %v2955_v33  ;;  %2379 = vmatpush3.bf16.msra.mxu1 %v2986_v55 }
 0x270   :  { %2353 = vmatprep.subr.bf16.mxu0 %v2961_v36  ;;  %2380 = vmatprep.subr.bf16.mxu1 %v2839_v0 }
 0x273   :  { %2355 = vmatpush1.bf16.msra.mxu0 %v2965_v42  ;;  %2382 = vmatpush3.bf16.msra.mxu1 %v2998_v4 }
 0x274   :  { %2357 = vmatprep.subr.bf16.mxu0 %v2976_v46  ;;  %2383 = vmatprep.subr.bf16.mxu1 %v2839_v0 }
 0x277   :  { %2359 = vmatpush1.bf16.msra.mxu0 %v2983_v53  ;;  %2385 = vmatpush3.bf16.msra.mxu1 %v3010_v14 }
 0x278   :  { %2361 = vmatprep.subr.bf16.mxu0 %v2990_v57  ;;  %2386 = vmatprep.subr.bf16.mxu1 %v2839_v0 }
 0x27b   :  { %2363 = vmatpush1.bf16.msra.mxu0 %v2995_v63  ;;  %2388 = vmatpush3.bf16.msra.mxu1 %v3017_v20 }
 0x27c   :  { %2365 = vmatprep.subr.bf16.mxu0 %v3002_v7  ;;  %2389 = vmatprep.subr.bf16.mxu1 %v2839_v0 }
 0x27f   :  { %2367 = vmatpush1.bf16.msra.mxu0 %v3007_v13  ;;  %2391 = vmatpush3.bf16.msra.mxu1 %v3026_v26 }
 0x280   :  { %2393 = vmatprep.subr.bf16.mxu0 %v2933_v6  ;;  %2424 = vmatprep.subr.bf16.mxu1 %v2839_v0 }
 0x335   :  { %v551_v61 = vpop.f32.mrb[4].mxu0  ;;  %v622_v62 = vpop.f32.mrb[4].mxu1 }
 0x336   :  { %v626_v3 = vadd.f32 %v551_v61, %v482_v60  ;;  %v553_v8 = vpop.f32.mrb[5].mxu0  ;;  %v1957_v9 = vpop.f32.mrb[5].mxu1  ;;  %v640_v27 = vadd.f32 %v3070_v48, %v622_v62 }
 0x337   :  { %v633_v15 = vadd.f32 %v553_v8, %v483_v5  ;;  %v660_v9 = vld [vmem:[#allocation3 + $0x58] sm:$0xff] }
 0x338   :  { %v1679_v12 = vmul.f32 -1.442695, %v626_v3 }
 0x339   :  { %v1680_v18 = vmul.f32 -1.442695, %v633_v15 }
 0x33a   :  { %2674 = vpow2.f32 %v1679_v12 }
 0x33b   :  { %2676 = vpow2.f32 %v1680_v18 }
 0x344   :  { %v2675_v19 = vpop.eup %2674 }
 0x345   :  { %v630_v21 = vadd.f32 1.0, %v2675_v19  ;;  %v2677_v23 = vpop.eup %2676 }
 0x346   :  { %v637_v25 = vadd.f32 1.0, %v2677_v23 }
 0x347   :  { %2678 = vrcp.f32 %v630_v21 }
 0x348   :  { %2680 = vrcp.f32 %v637_v25 }
 0x351   :  { %v2679_v28 = vpop.eup %2678 }
 0x352   :  { %v641_v31 = vmul.f32 %v2679_v28, %v640_v27  ;;  %v2681_v34 = vpop.eup %2680  ;;  %v830_v27 = vpop.permute.xlu1 %829 }
 0x353   :  { %v644_v37 = vsub.f32 1.0, %v2681_v34  ;;  %v646_v2 = vmul.f32 %v2681_v34, %v3121_v59  ;;  %vm831_vm12 = vcmp.eq.s32.totalorder %v830_v27, 1 }
 0x354   :  { %v642_v32 = vadd.f32 %v641_v31, %v484_v29  ;;  %v834_v31 = vld [vmem:[#allocation3 + $0x60] sm:$0xff] }
 0x356   :  { %2682 = vtanh.f32 %v642_v32 }
 0x360   :  { %v2683_v38 = vpop.eup %2682 }
 0x361   :  { %v645_v45 = vmul.f32 %v2683_v38, %v644_v37  ;;  %v835_v38 = vld [vmem:[#allocation3 + $0x68] sm:$0xff] }
 0x363   :  { %v647_v40 = vadd.f32 %v646_v2, %v645_v45 }
 0x365   :  { %v3163_v41 = vsel %vm655_vm11, %v647_v40, %v3121_v59 }
 0x366   :  { %726 = vmatmul.mubr.f32.vlgmr.msra.gmra.mrb[6].mxu0 %v3163_v41  ;;  %1991 = vmatmul.mubr.f32.vlgmr.msra.gmra.mrb[6].mxu1 %v3163_v41 }
 0x367   :  { %2395 = vmatpush1.bf16.msra.mxu0 %v2935_v10  ;;  %2426 = vmatpush3.bf16.msra.mxu1 %v2952_v30 }
 0x368   :  { %2397 = vmatprep.subr.bf16.mxu0 %v2937_v11  ;;  %2427 = vmatprep.subr.bf16.mxu1 %v2839_v0 }
 0x369   :  { %901 = vmatprep.mubr.f32.mxu0 %v2840_v1  ;;  %2025 = vmatprep.mubr.msk.f32.mxu1 %vm2841_vm0, %v2840_v1 }
 0x36b   :  { %2399 = vmatpush1.bf16.msra.mxu0 %v2941_v16  ;;  %2429 = vmatpush3.bf16.msra.mxu1 %v2958_v35 }
 0x36c   :  { %2401 = vmatprep.subr.bf16.mxu0 %v2944_v17  ;;  %2430 = vmatprep.subr.bf16.mxu1 %v2839_v0 }
 0x36f   :  { %2403 = vmatpush1.bf16.msra.mxu0 %v2947_v22  ;;  %2432 = vmatpush3.bf16.msra.mxu1 %v2968_v44 }
 0x370   :  { %2405 = vmatprep.subr.bf16.mxu0 %v2950_v24  ;;  %2433 = vmatprep.subr.bf16.mxu1 %v2839_v0 }
 0x373   :  { %2407 = vmatpush1.bf16.msra.mxu0 %v2955_v33  ;;  %2435 = vmatpush3.bf16.msra.mxu1 %v2986_v55 }
 0x374   :  { %2409 = vmatprep.subr.bf16.mxu0 %v2961_v36  ;;  %2436 = vmatprep.subr.bf16.mxu1 %v2839_v0 }
 0x377   :  { %2411 = vmatpush1.bf16.msra.mxu0 %v2965_v42  ;;  %2438 = vmatpush3.bf16.msra.mxu1 %v2998_v4 }
 0x378   :  { %2413 = vmatprep.subr.bf16.mxu0 %v2976_v46  ;;  %2439 = vmatprep.subr.bf16.mxu1 %v2839_v0 }
 0x37b   :  { %2415 = vmatpush1.bf16.msra.mxu0 %v2983_v53  ;;  %2441 = vmatpush3.bf16.msra.mxu1 %v3010_v14 }
 0x37c   :  { %2417 = vmatprep.subr.bf16.mxu0 %v2990_v57  ;;  %2442 = vmatprep.subr.bf16.mxu1 %v2839_v0 }
 0x37f   :  { %2419 = vmatpush1.bf16.msra.mxu0 %v2995_v63  ;;  %2444 = vmatpush3.bf16.msra.mxu1 %v3017_v20 }
 0x380   :  { %2421 = vmatprep.subr.bf16.mxu0 %v3002_v7  ;;  %2445 = vmatprep.subr.bf16.mxu1 %v2839_v0 }
 0x383   :  { %2423 = vmatpush1.bf16.msra.mxu0 %v3007_v13  ;;  %2447 = vmatpush3.bf16.msra.mxu1 %v3026_v26 }
 0x384   :  { %2449 = vmatprep.subr.bf16.mxu0 %v2933_v6  ;;  %2480 = vmatprep.subr.bf16.mxu1 %v2839_v0 }
 0x439   :  { %v727_v47 = vpop.f32.mrb[6].mxu0  ;;  %v798_v49 = vpop.f32.mrb[6].mxu1 }
 0x43a   :  { %v802_v50 = vadd.f32 %v727_v47, %v658_v43  ;;  %v729_v52 = vpop.f32.mrb[7].mxu0  ;;  %v1992_v54 = vpop.f32.mrb[7].mxu1  ;;  %v816_v5 = vadd.f32 %v3070_v48, %v798_v49 }
 0x43b   :  { %v809_v58 = vadd.f32 %v729_v52, %v659_v51  ;;  %v836_v54 = vld [vmem:[#allocation3 + $0x70] sm:$0xff] }
 0x43c   :  { %v1682_v56 = vmul.f32 -1.442695, %v802_v50 }
 0x43d   :  { %v1683_v59 = vmul.f32 -1.442695, %v809_v58 }
 0x43e   :  { %2684 = vpow2.f32 %v1682_v56 }
 0x43f   :  { %2686 = vpow2.f32 %v1683_v59 }
 0x448   :  { %v2685_v60 = vpop.eup %2684 }
 0x449   :  { %v806_v61 = vadd.f32 1.0, %v2685_v60  ;;  %v2687_v62 = vpop.eup %2686 }
 0x44a   :  { %v813_v3 = vadd.f32 1.0, %v2687_v62 }
 0x44b   :  { %2688 = vrcp.f32 %v806_v61 }
 0x44c   :  { %2690 = vrcp.f32 %v813_v3 }
 0x455   :  { %v2689_v8 = vpop.eup %2688 }
 0x456   :  { %v817_v12 = vmul.f32 %v2689_v8, %v816_v5  ;;  %v2691_v18 = vpop.eup %2690  ;;  %v1006_v5 = vpop.permute.xlu0 %1005 }
 0x457   :  { %v820_v19 = vsub.f32 1.0, %v2691_v18  ;;  %v822_v25 = vmul.f32 %v2691_v18, %v3163_v41  ;;  %vm1007_vm13 = vcmp.eq.s32.totalorder %v1006_v5, 1  ;;  %v1551_v5 = vld [vmem:[#allocation8 + $0x18] sm:$0xff] }
 0x458   :  { %v818_v15 = vadd.f32 %v817_v12, %v660_v9  ;;  %v1010_v12 = vld [vmem:[#allocation3 + $0x78] sm:$0xff] }
 0x45a   :  { %2692 = vtanh.f32 %v818_v15 }
 0x464   :  { %v2693_v21 = vpop.eup %2692 }
 0x465   :  { %v821_v23 = vmul.f32 %v2693_v21, %v820_v19  ;;  %v1011_v21 = vld [vmem:[#allocation3 + $0x80] sm:$0xff] }
 0x467   :  { %v823_v28 = vadd.f32 %v822_v25, %v821_v23 }
 0x469   :  { %v3205_v29 = vsel %vm831_vm12, %v823_v28, %v3163_v41 }
 0x46a   :  { %902 = vmatmul.mubr.f32.vlgmr.msra.gmra.mrb[8].mxu0 %v3205_v29  ;;  %2026 = vmatmul.mubr.f32.vlgmr.msra.gmra.mrb[8].mxu1 %v3205_v29 }
 0x46b   :  { %2451 = vmatpush1.bf16.msra.mxu0 %v2935_v10  ;;  %2482 = vmatpush3.bf16.msra.mxu1 %v2952_v30 }
 0x46c   :  { %2453 = vmatprep.subr.bf16.mxu0 %v2937_v11  ;;  %2483 = vmatprep.subr.bf16.mxu1 %v2839_v0 }
 0x46d   :  { %1077 = vmatprep.mubr.f32.mxu0 %v2840_v1  ;;  %2060 = vmatprep.mubr.msk.f32.mxu1 %vm2841_vm0, %v2840_v1 }
 0x46f   :  { %2455 = vmatpush1.bf16.msra.mxu0 %v2941_v16  ;;  %2485 = vmatpush3.bf16.msra.mxu1 %v2958_v35 }
 0x470   :  { %2457 = vmatprep.subr.bf16.mxu0 %v2944_v17  ;;  %2486 = vmatprep.subr.bf16.mxu1 %v2839_v0 }
 0x473   :  { %2459 = vmatpush1.bf16.msra.mxu0 %v2947_v22  ;;  %2488 = vmatpush3.bf16.msra.mxu1 %v2968_v44 }
 0x474   :  { %2461 = vmatprep.subr.bf16.mxu0 %v2950_v24  ;;  %2489 = vmatprep.subr.bf16.mxu1 %v2839_v0 }
 0x477   :  { %2463 = vmatpush1.bf16.msra.mxu0 %v2955_v33  ;;  %2491 = vmatpush3.bf16.msra.mxu1 %v2986_v55 }
 0x478   :  { %2465 = vmatprep.subr.bf16.mxu0 %v2961_v36  ;;  %2492 = vmatprep.subr.bf16.mxu1 %v2839_v0 }
 0x47b   :  { %2467 = vmatpush1.bf16.msra.mxu0 %v2965_v42  ;;  %2494 = vmatpush3.bf16.msra.mxu1 %v2998_v4 }
 0x47c   :  { %2469 = vmatprep.subr.bf16.mxu0 %v2976_v46  ;;  %2495 = vmatprep.subr.bf16.mxu1 %v2839_v0 }
 0x47f   :  { %2471 = vmatpush1.bf16.msra.mxu0 %v2983_v53  ;;  %2497 = vmatpush3.bf16.msra.mxu1 %v3010_v14 }
 0x480   :  { %2473 = vmatprep.subr.bf16.mxu0 %v2990_v57  ;;  %2498 = vmatprep.subr.bf16.mxu1 %v2839_v0 }
 0x483   :  { %2475 = vmatpush1.bf16.msra.mxu0 %v2995_v63  ;;  %2500 = vmatpush3.bf16.msra.mxu1 %v3017_v20 }
 0x484   :  { %2477 = vmatprep.subr.bf16.mxu0 %v3002_v7  ;;  %2501 = vmatprep.subr.bf16.mxu1 %v2839_v0 }
 0x487   :  { %2479 = vmatpush1.bf16.msra.mxu0 %v3007_v13  ;;  %2503 = vmatpush3.bf16.msra.mxu1 %v3026_v26 }
 0x488   :  { %2505 = vmatprep.subr.bf16.mxu0 %v2933_v6  ;;  %2536 = vmatprep.subr.bf16.mxu1 %v2839_v0 }
 0x53d   :  { %v903_v32 = vpop.f32.mrb[8].mxu0  ;;  %v974_v34 = vpop.f32.mrb[8].mxu1 }
 0x53e   :  { %v978_v37 = vadd.f32 %v903_v32, %v834_v31  ;;  %v905_v39 = vpop.f32.mrb[9].mxu0  ;;  %v2027_v45 = vpop.f32.mrb[9].mxu1  ;;  %v992_v51 = vadd.f32 %v3070_v48, %v974_v34 }
 0x53f   :  { %v985_v40 = vadd.f32 %v905_v39, %v835_v38  ;;  %v1012_v39 = vld [vmem:[#allocation3 + $0x88] sm:$0xff] }
 0x540   :  { %v1685_v2 = vmul.f32 -1.442695, %v978_v37 }
 0x541   :  { %v1686_v41 = vmul.f32 -1.442695, %v985_v40 }
 0x542   :  { %2694 = vpow2.f32 %v1685_v2 }
 0x543   :  { %2696 = vpow2.f32 %v1686_v41 }
 0x54c   :  { %v2695_v43 = vpop.eup %2694 }
 0x54d   :  { %v982_v47 = vadd.f32 1.0, %v2695_v43  ;;  %v2697_v49 = vpop.eup %2696 }
 0x54e   :  { %v989_v50 = vadd.f32 1.0, %v2697_v49 }
 0x54f   :  { %2698 = vrcp.f32 %v982_v47 }
 0x550   :  { %2700 = vrcp.f32 %v989_v50  ;;  %v1182_v50 = vpop.permute.xlu1 %1181 }
 0x551   :  { %vm1183_vm14 = vcmp.eq.s32.totalorder %v1182_v50, 1 }
 0x559   :  { %v2699_v52 = vpop.eup %2698 }
 0x55a   :  { %v993_v56 = vmul.f32 %v2699_v52, %v992_v51  ;;  %v2701_v59 = vpop.eup %2700 }
 0x55b   :  { %v996_v60 = vsub.f32 1.0, %v2701_v59  ;;  %v998_v3 = vmul.f32 %v2701_v59, %v3205_v29 }
 0x55c   :  { %v994_v58 = vadd.f32 %v993_v56, %v836_v54  ;;  %v1358_v56 = vpop.permute.xlu0 %1357 }
 0x55d   :  { %vm1359_vm15 = vcmp.eq.s32.totalorder %v1358_v56, 1 }
 0x55e   :  { %2702 = vtanh.f32 %v994_v58 }
 0x568   :  { %v2703_v61 = vpop.eup %2702 }
 0x569   :  { %v997_v62 = vmul.f32 %v2703_v61, %v996_v60  ;;  %v1548_v60 = vld [vmem:[#allocation8] sm:$0xff]  ;;  %v1549_v61 = vld [vmem:[#allocation8 + $0x8] sm:$0xff] }
 0x56b   :  { %v999_v8 = vadd.f32 %v998_v3, %v997_v62  ;;  %v2617_v62 = vpack.c.bf16 %v1549_v61, %v1548_v60  ;;  %v1550_v3 = vld [vmem:[#allocation8 + $0x10] sm:$0xff] }
 0x56d   :  { %v3247_v9 = vsel %vm1007_vm13, %v999_v8, %v3205_v29  ;;  %v2620_v8 = vpack.c.bf16 %v1551_v5, %v1550_v3 }
 0x56e   :  { %1078 = vmatmul.mubr.f32.vlgmr.msra.gmra.mrb[10].mxu0 %v3247_v9  ;;  %2061 = vmatmul.mubr.f32.vlgmr.msra.gmra.mrb[10].mxu1 %v3247_v9 }
 0x56f   :  { %2507 = vmatpush1.bf16.msra.mxu0 %v2935_v10  ;;  %2538 = vmatpush3.bf16.msra.mxu1 %v2952_v30 }
 0x570   :  { %2509 = vmatprep.subr.bf16.mxu0 %v2937_v11  ;;  %2539 = vmatprep.subr.bf16.mxu1 %v2839_v0 }
 0x571   :  { %1253 = vmatprep.mubr.f32.mxu0 %v2840_v1  ;;  %2095 = vmatprep.mubr.msk.f32.mxu1 %vm2841_vm0, %v2840_v1 }
 0x573   :  { %2511 = vmatpush1.bf16.msra.mxu0 %v2941_v16  ;;  %2541 = vmatpush3.bf16.msra.mxu1 %v2958_v35 }
 0x574   :  { %2513 = vmatprep.subr.bf16.mxu0 %v2944_v17  ;;  %2542 = vmatprep.subr.bf16.mxu1 %v2839_v0 }
 0x577   :  { %2515 = vmatpush1.bf16.msra.mxu0 %v2947_v22  ;;  %2544 = vmatpush3.bf16.msra.mxu1 %v2968_v44 }
 0x578   :  { %2517 = vmatprep.subr.bf16.mxu0 %v2950_v24  ;;  %2545 = vmatprep.subr.bf16.mxu1 %v2839_v0 }
 0x57b   :  { %2519 = vmatpush1.bf16.msra.mxu0 %v2955_v33  ;;  %2547 = vmatpush3.bf16.msra.mxu1 %v2986_v55 }
 0x57c   :  { %2521 = vmatprep.subr.bf16.mxu0 %v2961_v36  ;;  %2548 = vmatprep.subr.bf16.mxu1 %v2839_v0 }
 0x57f   :  { %2523 = vmatpush1.bf16.msra.mxu0 %v2965_v42  ;;  %2550 = vmatpush3.bf16.msra.mxu1 %v2998_v4 }
 0x580   :  { %2525 = vmatprep.subr.bf16.mxu0 %v2976_v46  ;;  %2551 = vmatprep.subr.bf16.mxu1 %v2839_v0 }
 0x583   :  { %2527 = vmatpush1.bf16.msra.mxu0 %v2983_v53  ;;  %2553 = vmatpush3.bf16.msra.mxu1 %v3010_v14 }
 0x584   :  { %2529 = vmatprep.subr.bf16.mxu0 %v2990_v57  ;;  %2554 = vmatprep.subr.bf16.mxu1 %v2839_v0 }
 0x587   :  { %2531 = vmatpush1.bf16.msra.mxu0 %v2995_v63  ;;  %2556 = vmatpush3.bf16.msra.mxu1 %v3017_v20 }
 0x588   :  { %2533 = vmatprep.subr.bf16.mxu0 %v3002_v7  ;;  %2557 = vmatprep.subr.bf16.mxu1 %v2839_v0 }
 0x58b   :  { %2535 = vmatpush1.bf16.msra.mxu0 %v3007_v13  ;;  %2559 = vmatpush3.bf16.msra.mxu1 %v3026_v26 }
 0x58c   :  { %2561 = vmatprep.subr.bf16.mxu0 %v2933_v6  ;;  %2592 = vmatprep.subr.bf16.mxu1 %v2839_v0 }
 0x641   :  { %v1079_v15 = vpop.f32.mrb[10].mxu0  ;;  %v1150_v18 = vpop.f32.mrb[10].mxu1 }
 0x642   :  { %v1154_v19 = vadd.f32 %v1079_v15, %v1010_v12  ;;  %v1081_v23 = vpop.f32.mrb[11].mxu0  ;;  %v2062_v25 = vpop.f32.mrb[11].mxu1  ;;  %v1168_v6 = vadd.f32 %v3070_v48, %v1150_v18  ;;  %v1553_v12 = vld [vmem:[#allocation8 + $0x28] sm:$0xff]  ;;  %v1554_v18 = vld [vmem:[#allocation8 + $0x30] sm:$0xff] }
 0x643   :  { %v1161_v28 = vadd.f32 %v1081_v23, %v1011_v21  ;;  %v1556_v21 = vld [vmem:[#allocation8 + $0x40] sm:$0xff]  ;;  %v1557_v23 = vld [vmem:[#allocation8 + $0x48] sm:$0xff]  ;;  %v1558_v25 = vld [vmem:[#allocation8 + $0x50] sm:$0xff] }
 0x644   :  { %v1688_v27 = vmul.f32 -1.442695, %v1154_v19 }
 0x645   :  { %v1689_v29 = vmul.f32 -1.442695, %v1161_v28  ;;  %v1559_v28 = vld [vmem:[#allocation8 + $0x58] sm:$0xff] }
 0x646   :  { %2704 = vpow2.f32 %v1688_v27  ;;  %v2629_v27 = vpack.c.bf16 %v1557_v23, %v1556_v21 }
 0x647   :  { %2706 = vpow2.f32 %v1689_v29  ;;  %v2632_v29 = vpack.c.bf16 %v1559_v28, %v1558_v25 }
 0x650   :  { %v2705_v31 = vpop.eup %2704 }
 0x651   :  { %v1158_v32 = vadd.f32 1.0, %v2705_v31  ;;  %v2707_v34 = vpop.eup %2706  ;;  %v1560_v31 = vld [vmem:[#allocation8 + $0x60] sm:$0xff] }
 0x652   :  { %v1165_v37 = vadd.f32 1.0, %v2707_v34 }
 0x653   :  { %2708 = vrcp.f32 %v1158_v32  ;;  %v1561_v32 = vld [vmem:[#allocation8 + $0x68] sm:$0xff] }
 0x654   :  { %2710 = vrcp.f32 %v1165_v37  ;;  %v2635_v34 = vpack.c.bf16 %v1561_v32, %v1560_v31  ;;  %v1562_v37 = vld [vmem:[#allocation8 + $0x70] sm:$0xff] }
 0x65d   :  { %v2709_v38 = vpop.eup %2708 }
 0x65e   :  { %v1169_v45 = vmul.f32 %v2709_v38, %v1168_v6  ;;  %v2711_v40 = vpop.eup %2710  ;;  %v1563_v6 = vld [vmem:[#allocation8 + $0x78] sm:$0xff] }
 0x65f   :  { %v1172_v41 = vsub.f32 1.0, %v2711_v40  ;;  %v1174_v49 = vmul.f32 %v2711_v40, %v3247_v9  ;;  %v2638_v38 = vpack.c.bf16 %v1563_v6, %v1562_v37 }
 0x660   :  { %v1170_v2 = vadd.f32 %v1169_v45, %v1012_v39  ;;  %v1362_v39 = vld [vmem:[#allocation3 + $0xa8] sm:$0xff] }
 0x662   :  { %2712 = vtanh.f32 %v1170_v2 }
 0x66c   :  { %v2713_v43 = vpop.eup %2712 }
 0x66d   :  { %v1173_v47 = vmul.f32 %v2713_v43, %v1172_v41  ;;  %v1363_v41 = vld [vmem:[#allocation3 + $0xb0] sm:$0xff] }
 0x66f   :  { %v1175_v51 = vadd.f32 %v1174_v49, %v1173_v47 }
 0x671   :  { %v3289_v52 = vsel %vm1183_vm14, %v1175_v51, %v3247_v9  ;;  %v1552_v9 = vld [vmem:[#allocation8 + $0x20] sm:$0xff] }
 0x672   :  { %1254 = vmatmul.mubr.f32.vlgmr.msra.gmra.mrb[12].mxu0 %v3289_v52  ;;  %2096 = vmatmul.mubr.f32.vlgmr.msra.gmra.mrb[12].mxu1 %v3289_v52  ;;  %v2623_v15 = vpack.c.bf16 %v1553_v12, %v1552_v9 }
 0x673   :  { %2563 = vmatpush1.bf16.msra.mxu0 %v2935_v10  ;;  %2594 = vmatpush3.bf16.msra.mxu1 %v2952_v30  ;;  %v1186_v10 = vld [vmem:[#allocation3 + $0x90] sm:$0xff] }
 0x674   :  { %2565 = vmatprep.subr.bf16.mxu0 %v2937_v11  ;;  %2595 = vmatprep.subr.bf16.mxu1 %v2839_v0 }
 0x675   :  { %1429 = vmatprep.mubr.f32.mxu0 %v2840_v1  ;;  %2130 = vmatprep.mubr.msk.f32.mxu1 %vm2841_vm0, %v2840_v1 }
 0x677   :  { %2567 = vmatpush1.bf16.msra.mxu0 %v2941_v16  ;;  %2597 = vmatpush3.bf16.msra.mxu1 %v2958_v35 }
 0x678   :  { %2569 = vmatprep.subr.bf16.mxu0 %v2944_v17  ;;  %2598 = vmatprep.subr.bf16.mxu1 %v2839_v0 }
 0x67b   :  { %2571 = vmatpush1.bf16.msra.mxu0 %v2947_v22  ;;  %2600 = vmatpush3.bf16.msra.mxu1 %v2968_v44  ;;  %v1187_v22 = vld [vmem:[#allocation3 + $0x98] sm:$0xff] }
 0x67c   :  { %2573 = vmatprep.subr.bf16.mxu0 %v2950_v24  ;;  %2601 = vmatprep.subr.bf16.mxu1 %v2839_v0 }
 0x67f   :  { %2575 = vmatpush1.bf16.msra.mxu0 %v2955_v33  ;;  %2603 = vmatpush3.bf16.msra.mxu1 %v2986_v55 }
 0x680   :  { %2577 = vmatprep.subr.bf16.mxu0 %v2961_v36  ;;  %2604 = vmatprep.subr.bf16.mxu1 %v2839_v0 }
 0x683   :  { %2579 = vmatpush1.bf16.msra.mxu0 %v2965_v42  ;;  %2606 = vmatpush3.bf16.msra.mxu1 %v2998_v4 }
 0x684   :  { %2581 = vmatprep.subr.bf16.mxu0 %v2976_v46  ;;  %2607 = vmatprep.subr.bf16.mxu1 %v2839_v0 }
 0x687   :  { %2583 = vmatpush1.bf16.msra.mxu0 %v2983_v53  ;;  %2609 = vmatpush3.bf16.msra.mxu1 %v3010_v14 }
 0x688   :  { %2585 = vmatprep.subr.bf16.mxu0 %v2990_v57  ;;  %2610 = vmatprep.subr.bf16.mxu1 %v2839_v0 }
 0x68b   :  { %2587 = vmatpush1.bf16.msra.mxu0 %v2995_v63  ;;  %2612 = vmatpush3.bf16.msra.mxu1 %v3017_v20  ;;  %v1188_v63 = vld [vmem:[#allocation3 + $0xa0] sm:$0xff] }
 0x68c   :  { %2589 = vmatprep.subr.bf16.mxu0 %v3002_v7  ;;  %2613 = vmatprep.subr.bf16.mxu1 %v2839_v0 }
 0x68f   :  { %2591 = vmatpush1.bf16.msra.mxu0 %v3007_v13  ;;  %2615 = vmatpush3.bf16.msra.mxu1 %v3026_v26 }
 0x690   :  { %2616 = vmatprep.subr.bf16.mxu0 %v2839_v0 }
 0x745   :  { %v1255_v11 = vpop.f32.mrb[12].mxu0  ;;  %v1326_v16 = vpop.f32.mrb[12].mxu1 }
 0x746   :  { %v1330_v17 = vadd.f32 %v1255_v11, %v1186_v10  ;;  %v1257_v24 = vpop.f32.mrb[13].mxu0  ;;  %v2097_v30 = vpop.f32.mrb[13].mxu1  ;;  %v1344_v55 = vadd.f32 %v3070_v48, %v1326_v16 }
 0x747   :  { %v1337_v35 = vadd.f32 %v1257_v24, %v1187_v22  ;;  %v1364_v22 = vld [vmem:[#allocation3 + $0xb8] sm:$0xff] }
 0x748   :  { %v1691_v33 = vmul.f32 -1.442695, %v1330_v17 }
 0x749   :  { %v1692_v36 = vmul.f32 -1.442695, %v1337_v35 }
 0x74a   :  { %2714 = vpow2.f32 %v1691_v33 }
 0x74b   :  { %2716 = vpow2.f32 %v1692_v36 }
 0x754   :  { %v2715_v42 = vpop.eup %2714 }
 0x755   :  { %v1334_v44 = vadd.f32 1.0, %v2715_v42  ;;  %v2717_v46 = vpop.eup %2716  ;;  %v1534_v42 = vpop.permute.xlu1 %1533 }
 0x756   :  { %v1341_v53 = vadd.f32 1.0, %v2717_v46 }
 0x757   :  { %2718 = vrcp.f32 %v1334_v44 }
 0x758   :  { %2720 = vrcp.f32 %v1341_v53 }
 0x761   :  { %v2719_v57 = vpop.eup %2718 }
 0x762   :  { %v1345_v4 = vmul.f32 %v2719_v57, %v1344_v55  ;;  %v2721_v13 = vpop.eup %2720  ;;  %v1545_v55 = vpop.permute.xlu0 %1544 }
 0x763   :  { %v1348_v14 = vsub.f32 1.0, %v2721_v13  ;;  %v1350_v54 = vmul.f32 %v2721_v13, %v3289_v52 }
 0x764   :  { %v1346_v7 = vadd.f32 %v1345_v4, %v1188_v63 }
 0x766   :  { %2722 = vtanh.f32 %v1346_v7  ;;  %v1697_v7 = vld [vmem:[%s3367_s6] ss:$0 sm:$0xff]  ;;  %s2804_s6 = scalar_lea.vmem %s1663_s21, 128 }
 0x767   :  { %p2805_p10 = scmp.ne.s32.totalorder %s1663_s21, %s2804_s6  ;;  %p2810_p12 = scmp.lt.s32.totalorder %s2804_s6, %s2804_s6 }
 0x769   :  { %p2811_p13 = por %p2810_p12, %p2809_p11 }
 0x76b   :  { %p2812_p0 = pnand %p2811_p13, %p2805_p10 }
 0x770   :  { %v2723_v20 = vpop.eup %2722 }
 0x771   :  { %v1349_v26 = vmul.f32 %v2723_v20, %v1348_v14 }
 0x773   :  { %v1351_v58 = vadd.f32 %v1350_v54, %v1349_v26 }
 0x775   :  { %v3330_v59 = vsel %vm1359_vm15, %v1351_v58, %v3289_v52 }
 0x776   :  { %1430 = vmatmul.mubr.f32.vlgmr.msra.gmra.mrb[14].mxu0 %v3330_v59  ;;  %2131 = vmatmul.mubr.f32.vlgmr.msra.gmra.mrb[14].mxu1 %v3330_v59 }
 0x777   :  { %2165 = vmatprep.mubr.msk.f32.mxu0 %vm2841_vm0, %v2840_v1  ;;  %2618 = vmatpush3.bf16.msra.mxu0 %v2617_v62  ;;  %v1555_v1 = vld [vmem:[#allocation8 + $0x38] sm:$0xff]  ;;  %vm1535_vm0 = vcmp.eq.s32.totalorder %v1534_v42, 1 }
 0x778   :  { %2619 = vmatprep.subr.bf16.mxu0 %v2839_v0  ;;  %v2626_v19 = vpack.c.bf16 %v1555_v1, %v1554_v18 }
 0x77b   :  { %2621 = vmatpush3.bf16.msra.mxu0 %v2620_v8 }
 0x77c   :  { %2622 = vmatprep.subr.bf16.mxu0 %v2839_v0 }
 0x77f   :  { %2624 = vmatpush3.bf16.msra.mxu0 %v2623_v15 }
 0x780   :  { %2625 = vmatprep.subr.bf16.mxu0 %v2839_v0 }
 0x783   :  { %2627 = vmatpush3.bf16.msra.mxu0 %v2626_v19 }
 0x784   :  { %2628 = vmatprep.subr.bf16.mxu0 %v2839_v0 }
 0x787   :  { %2630 = vmatpush3.bf16.msra.mxu0 %v2629_v27 }
 0x788   :  { %2631 = vmatprep.subr.bf16.mxu0 %v2839_v0 }
 0x78b   :  { %2633 = vmatpush3.bf16.msra.mxu0 %v2632_v29 }
 0x78c   :  { %2634 = vmatprep.subr.bf16.mxu0 %v2839_v0 }
 0x78f   :  { %2636 = vmatpush3.bf16.msra.mxu0 %v2635_v34 }
 0x790   :  { %2637 = vmatprep.subr.bf16.mxu0 %v2839_v0 }
 0x793   :  { %2639 = vmatpush3.bf16.msra.mxu0 %v2638_v38 }
 0x849   :  { %v1431_v45 = vpop.f32.mrb[14].mxu0  ;;  %v1502_v2 = vpop.f32.mrb[14].mxu1 }
 0x84a   :  { %v1506_v40 = vadd.f32 %v1431_v45, %v1362_v39  ;;  %v1433_v43 = vpop.f32.mrb[15].mxu0  ;;  %v2132_v47 = vpop.f32.mrb[15].mxu1  ;;  %v1520_v0 = vadd.f32 %v3070_v48, %v1502_v2  ;;  %v1641_v48 = vlaneseq }
 0x84b   :  { %v1513_v50 = vadd.f32 %v1433_v43, %v1363_v41 }
 0x84c   :  { %v1694_v49 = vmul.f32 -1.442695, %v1506_v40  ;;  %v1642_v4 = vand.u32 127, %v1641_v48 }
 0x84d   :  { %v1695_v51 = vmul.f32 -1.442695, %v1513_v50 }
 0x84e   :  { %2724 = vpow2.f32 %v1694_v49  ;;  %vm1643_vm1 = vcmp.lt.s32.totalorder %v1642_v4, 2 }
 0x84f   :  { %2726 = vpow2.f32 %v1695_v51 }
 0x858   :  { %v2725_v52 = vpop.eup %2724 }
 0x859   :  { %v1510_v10 = vadd.f32 1.0, %v2725_v52  ;;  %v2727_v11 = vpop.eup %2726 }
 0x85a   :  { %v1517_v16 = vadd.f32 1.0, %v2727_v11 }
 0x85b   :  { %2728 = vrcp.f32 %v1510_v10 }
 0x85c   :  { %2730 = vrcp.f32 %v1517_v16 }
 0x865   :  { %v2729_v17 = vpop.eup %2728 }
 0x866   :  { %v1521_v24 = vmul.f32 %v2729_v17, %v1520_v0  ;;  %v2731_v33 = vpop.eup %2730 }
 0x867   :  { %v1524_v35 = vsub.f32 1.0, %v2731_v33  ;;  %v1526_v46 = vmul.f32 %v2731_v33, %v3330_v59 }
 0x868   :  { %v1522_v30 = vadd.f32 %v1521_v24, %v1364_v22 }
 0x86a   :  { %2732 = vtanh.f32 %v1522_v30 }
 0x874   :  { %v2733_v36 = vpop.eup %2732 }
 0x875   :  { %v1525_v44 = vmul.f32 %v2733_v36, %v1524_v35 }
 0x877   :  { %v1527_v53 = vadd.f32 %v1526_v46, %v1525_v44 }
 0x879   :  { %v1536_v57 = vsel %vm1535_vm0, %v1527_v53, %v3330_v59 }
 0x87a   :  { %v1547_v63 = vmul.f32 %v1545_v55, %v1536_v57 }
 0x87c   :  { %2166 = vmatmul.mubr.f32.vlgmr.msra.gmra.mrb[16].mxu0 %v1547_v63 }
 0x94f   :  { %v1637_v13 = vpop.f32.mrb[16].mxu0 }
 0x950   :  { %v1638_v14 = vadd.f32 %v1697_v7, %v1637_v13  ;;  %v2167_v20 = vpop.f32.mrb[17].mxu0 }
 0x952   :  { %v1644_v26 = vsel %vm1643_vm1, %v1638_v14, -1e+30 }
 0x953   :  { %1645 = vmax.xlane.f32.xlu1 %v1644_v26 }
 0x9e0   :  { %v1646_v54 = vpop.xlane.xlu1 %1645 }
 0x9e1   :  { %v1647_v56 = vsub.f32 %v1644_v26, %v1646_v54 }
 0x9e3   :  { %v1648_v58 = vmul.f32 1.442695, %v1647_v56 }
 0x9e5   :  { %2734 = vpow2.f32 %v1648_v58 }
 0x9ef   :  { %v2735_v60 = vpop.eup %2734 }
 0x9f0   :  { %v1650_v59 = vsel %vm1643_vm1, %v2735_v60, 0.0 }
 0x9f1   :  { %1651 = vadd.xlane.f32.xlu0 %v1650_v59 }
 0xa7e   :  { %v1652_v61 = vpop.xlane.xlu0 %1651 }
 0xa7f   :  { %2736 = vrcp.f32 %v1652_v61 }
 0xa89   :  { %v2737_v62 = vpop.eup %2736 }
 0xa8a   :  { %v1654_v3 = vmul.f32 %v2737_v62, %v1650_v59 }
 0xa8c   :  { %1655 = vst [vmem:[#allocation9] sm:$0xff] %v1654_v3 }
 0xa8d   :  { %2815 = shalt.err (!%p2812_p0)
}
 0xa8e   :  { %s2816_s24 = scalar_lea.hbm %s3368_s7, 128 }
 0xa8f   :  { %p2817_p1 = scmp.ne.s32.totalorder %s3368_s7, %s2816_s24  ;;  %p2820_p2 = scmp.lt.u32.totalorder %s2816_s24, %s3368_s7 }
 0xa91   :  { %p2822_p3 = pnand %p2820_p2, %p2817_p1 }
 0xa93   :  { %2825 = shalt.err (!%p2822_p3)
}
 0xa94   :  { %1665 = dma.vmem_to_hbm [thread:$0]  %s1663_s21, 128, %s3368_s7, [#allocation5]  }
 0xa95   :  { %2830 = dma.done.wait [#allocation5], 128  }
 0xa96   :  { %2831 = vsyncadd [#allocation5], 4294967168 }
 0xa97   :  { %1669 = vsyncpa [#allocation4], 1 }
 0xa98   :  { %1670 = vsyncpa [#allocation7], 1 }
 0xa99   :  { %1671 = vsyncpa [#allocation5], 1 }

</bundles_post_ra>
